<compile_context>
chip_gen: v7x
topology: tpu7x:2x2x1
jax: 0.10.0
libtpu: 0.0.40
codegen_flags: <defaults>
</compile_context>

<pallas_src>
import numpy as np

import jax
import jax.numpy as jnp
from jax.experimental import pallas as pl
from jax.experimental.pallas import tpu as pltpu


# ----------------------------------------------------------------------------
# Pallas kernel: the whole network, fully resident in VMEM
# ----------------------------------------------------------------------------
def _cnet_kernel(a0_ref,
                 rs0_ref, m0_ref, sh0_ref,
                 rs1_ref, m1_ref, sh1_ref,
                 rs2_ref, m2_ref, sh2_ref,
                 rs3_ref, m3_ref, b3_ref,
                 out_ref):
    def conv_taps(a, rs_ref, m_ref):
        # sum over the 3 kernel rows: (row gather / stride / pad) then
        # (W-unfolded weights, BN scale folded).  f32 accumulation throughout.
        y = None
        for kh in range(3):
            g = jnp.dot(rs_ref[kh], a, preferred_element_type=jnp.float32)
            t = jnp.dot(g, m_ref[kh].astype(jnp.float32),
                        preferred_element_type=jnp.float32)
            y = t if y is None else y + t
        return y

    a = a0_ref[...]                                        # (N*16, 16*Cin) f32
    for rs_ref, m_ref, sh_ref in ((rs0_ref, m0_ref, sh0_ref),
                                  (rs1_ref, m1_ref, sh1_ref),
                                  (rs2_ref, m2_ref, sh2_ref)):
        a = jnp.maximum(conv_taps(a, rs_ref, m_ref) + sh_ref[...], 0.0)
    # layer 3: conv (bias, no act) with global-average-pool folded into rs3/m3.
    out_ref[...] = conv_taps(a, rs3_ref, m3_ref) + b3_ref[...]


def _full_block(shape):
    zeros = (0,) * len(shape)
    return pl.BlockSpec(shape, lambda i, _z=zeros: _z)


@jax.jit
def cnet_forward(x_nchw, kparams):
    n, c, h, w = x_nchw.shape
    # NCHW -> NHWC -> (N*H, W*C) matrix view of the input (the only glue op).
    a0 = jnp.transpose(x_nchw, (0, 2, 3, 1)).reshape(n * h, w * c).astype(jnp.float32)

    num_classes = kparams["l3"][1].shape[-1]

    args, specs = [a0], [_full_block(a0.shape)]
    for name in ("l0", "l1", "l2", "l3"):
        for arr in kparams[name]:
            args.append(arr)
            specs.append(_full_block(arr.shape))

    return pl.pallas_call(
        _cnet_kernel,
        out_shape=jax.ShapeDtypeStruct((n, num_classes), jnp.float32),
        grid=(1,),
        in_specs=specs,
        out_specs=_full_block((n, num_classes)),
        compiler_params=pltpu.CompilerParams(dimension_semantics=("arbitrary",)),
    )(*args)


# ----------------------------------------------------------------------------
# One-time host-side weight prepacking (outside jit)
# ----------------------------------------------------------------------------
def _out_size(size, k=3, s=1, p=1):
    return (size + 2 * p - k) // s + 1


def _build_rowsel(n, h_in, oh, stride, kh):
    """0/1 matrix (N*OH, N*H): picks padded input row stride*p + kh - 1 per output row."""
    rs = np.zeros((n * oh, n * h_in), np.float32)
    for b in range(n):
        for p in range(oh):
            h = stride * p + kh - 1
            if 0 <= h < h_in:
                rs[b * oh + p, b * h_in + h] = 1.0
    return rs


def _build_wmat(w_hwio, w_in, ow, stride, kh, scale=None):
    """Conv weights for kernel row kh unfolded along W: (W_in*Cin, OW*Cout)."""
    _, _, cin, cout = w_hwio.shape
    m = np.zeros((w_in * cin, ow * cout), np.float32)
    for q in range(ow):
        for kw in range(3):
            wpos = stride * q + kw - 1
            if 0 <= wpos < w_in:
                blk = w_hwio[kh, kw]
                if scale is not None:
                    blk = blk * scale[None, :]
                m[wpos * cin:(wpos + 1) * cin, q * cout:(q + 1) * cout] = blk
    return m


def prepare_kernel_params(params, *, n, h, w):
    """Fold BN, unfold conv weights, fold the global pool. Run once per model."""
    kparams = {}
    cur_h, cur_w = h, w

    for i in range(3):  # Conv3x3 s2 p1 + folded BN + ReLU
        wgt, scale, shift = (np.asarray(t, np.float32) for t in params[f"l{i}"])
        oh, ow = _out_size(cur_h, s=2), _out_size(cur_w, s=2)
        rs = np.stack([_build_rowsel(n, cur_h, oh, 2, kh) for kh in range(3)])
        m = np.stack([_build_wmat(wgt, cur_w, ow, 2, kh, scale) for kh in range(3)])
        sh = np.tile(shift, ow)[None, :]                       # (1, OW*Cout)
        # bf16 only for the large unfolded weight mats (K >= 128); tiny ones stay f32.
        m_dtype = jnp.bfloat16 if m.shape[1] >= 128 else jnp.float32
        kparams[f"l{i}"] = (jnp.asarray(rs), jnp.asarray(m, m_dtype), jnp.asarray(sh))
        cur_h, cur_w = oh, ow

    # Final Conv3x3 s1 p1 (bias, no BN/act) with AdaptiveAvgPool2d((1,1)) folded in.
    wgt, bias = (np.asarray(t, np.float32) for t in params["l3"])
    cout = wgt.shape[3]
    oh, ow = _out_size(cur_h, s=1), _out_size(cur_w, s=1)
    pool_r = np.zeros((n, n * oh), np.float32)                 # mean over output rows
    for b in range(n):
        pool_r[b, b * oh:(b + 1) * oh] = 1.0 / oh
    pool_c = np.zeros((ow * cout, cout), np.float32)           # mean over output cols
    for q in range(ow):
        pool_c[q * cout:(q + 1) * cout, :] = np.eye(cout, dtype=np.float32) / ow
    rs = np.stack([pool_r @ _build_rowsel(n, cur_h, oh, 1, kh) for kh in range(3)])
    m = np.stack([_build_wmat(wgt, cur_w, ow, 1, kh) @ pool_c for kh in range(3)])
    kparams["l3"] = (jnp.asarray(rs), jnp.asarray(m), jnp.asarray(bias[None, :]))
    return kparams


# ----------------------------------------------------------------------------
# Parameter construction (deterministic, synthetic) and f32 JAX reference
# ----------------------------------------------------------------------------
def _fold_bn(gamma, beta, mean, var, eps=1e-5):
    scale = gamma / jnp.sqrt(var + eps)
    shift = beta - mean * scale
    return scale, shift


def init_params(key, in_channels=1, num_classes=10):
    specs = [(in_channels, 32), (32, 64), (64, 128), (128, num_classes)]
    params = {}
    for idx, (cin, cout) in enumerate(specs):
        key, kw_, kg, kb, km, kv, kbias = jax.random.split(key, 7)
        fan_in = 3 * 3 * cin
        w = jax.random.normal(kw_, (3, 3, cin, cout), jnp.float32) / jnp.sqrt(fan_in)
        if idx < 3:  # Conv + BN + ReLU
            gamma = 1.0 + 0.1 * jax.random.normal(kg, (cout,), jnp.float32)
            beta = 0.1 * jax.random.normal(kb, (cout,), jnp.float32)
            mean = 0.1 * jax.random.normal(km, (cout,), jnp.float32)
            var = jnp.abs(jax.random.normal(kv, (cout,), jnp.float32)) + 0.5
            scale, shift = _fold_bn(gamma, beta, mean, var)
            params[f"l{idx}"] = (w, scale, shift)
        else:        # Conv with bias, no BN, no activation
            bias = 0.1 * jax.random.normal(kbias, (cout,), jnp.float32)
            params[f"l{idx}"] = (w, bias)
    return params


def cnet_reference(x_nchw, params):
    x = jnp.transpose(x_nchw, (0, 2, 3, 1))
    dn = jax.lax.conv_dimension_numbers(x.shape, (3, 3, 1, 1), ("NHWC", "HWIO", "NHWC"))

    def conv(x, w, stride):
        return jax.lax.conv_general_dilated(
            x, w, window_strides=(stride, stride),
            padding=((1, 1), (1, 1)), dimension_numbers=dn)

    for i in range(3):
        w, scale, shift = params[f"l{i}"]
        x = jnp.maximum(conv(x, w, 2) * scale + shift, 0.0)
    w4, b4 = params["l3"]
    x = conv(x, w4, 1) + b4
    return jnp.mean(x, axis=(1, 2))  # (N, num_classes)


if __name__ == "__main__":
    key = jax.random.PRNGKey(0)
    kx, kp = jax.random.split(key)
    # Small shapes consistent with the module defaults: batch=2, in_channels=1, 16x16.
    x = jax.random.normal(kx, (2, 1, 16, 16), jnp.float32)
    params = init_params(kp, in_channels=1, num_classes=10)
    kparams = prepare_kernel_params(params, n=2, h=16, w=16)

    out = jax.block_until_ready(cnet_forward(x, kparams))
    assert out.shape == (2, 10), out.shape

    ref = jax.block_until_ready(cnet_reference(x, params))
    # bf16 is used only for the two large unfolded weight matrices (layers 1-2);
    # everything else is f32 with f32 accumulation -> modest tolerance vs f32 ref.
    if not jnp.allclose(out, ref, rtol=2e-2, atol=2e-2):
        raise RuntimeError("Pallas CNet output mismatch vs JAX reference")

    print("KERNEL_OK")
</pallas_src>

<mosaic_0001>
module attributes {stable_mosaic.version = 11 : i64} {
  func.func @_cnet_kernel(%arg0: i32, %arg1: memref<32x16xf32, #tpu.memory_space<vmem>>, %arg2: memref<3x16x32xf32, #tpu.memory_space<vmem>>, %arg3: memref<3x16x256xf32, #tpu.memory_space<vmem>>, %arg4: memref<1x256xf32, #tpu.memory_space<vmem>>, %arg5: memref<3x8x16xf32, #tpu.memory_space<vmem>>, %arg6: memref<3x256x256xbf16, #tpu.memory_space<vmem>>, %arg7: memref<1x256xf32, #tpu.memory_space<vmem>>, %arg8: memref<3x4x8xf32, #tpu.memory_space<vmem>>, %arg9: memref<3x256x256xbf16, #tpu.memory_space<vmem>>, %arg10: memref<1x256xf32, #tpu.memory_space<vmem>>, %arg11: memref<3x2x4xf32, #tpu.memory_space<vmem>>, %arg12: memref<3x256x10xf32, #tpu.memory_space<vmem>>, %arg13: memref<1x10xf32, #tpu.memory_space<vmem>>, %arg14: memref<2x10xf32, #tpu.memory_space<vmem>>) attributes {dimension_semantics = [#tpu.dimension_semantics<arbitrary>], iteration_bounds = array<i64: 1>, scalar_prefetch = 0 : i64, scratch_operands = 0 : i64, tpu.core_type = #tpu.core_type<tc>, window_params = [{pipeline_mode = #tpu.pipeline_mode<synchronous>, transform_indices = @transform_0, window_bounds = array<i64: 32, 16>}, {pipeline_mode = #tpu.pipeline_mode<synchronous>, transform_indices = @transform_1, window_bounds = array<i64: 3, 16, 32>}, {pipeline_mode = #tpu.pipeline_mode<synchronous>, transform_indices = @transform_2, window_bounds = array<i64: 3, 16, 256>}, {pipeline_mode = #tpu.pipeline_mode<synchronous>, transform_indices = @transform_3, window_bounds = array<i64: 1, 256>}, {pipeline_mode = #tpu.pipeline_mode<synchronous>, transform_indices = @transform_4, window_bounds = array<i64: 3, 8, 16>}, {pipeline_mode = #tpu.pipeline_mode<synchronous>, transform_indices = @transform_5, window_bounds = array<i64: 3, 256, 256>}, {pipeline_mode = #tpu.pipeline_mode<synchronous>, transform_indices = @transform_6, window_bounds = array<i64: 1, 256>}, {pipeline_mode = #tpu.pipeline_mode<synchronous>, transform_indices = @transform_7, window_bounds = array<i64: 3, 4, 8>}, {pipeline_mode = #tpu.pipeline_mode<synchronous>, transform_indices = @transform_8, window_bounds = array<i64: 3, 256, 256>}, {pipeline_mode = #tpu.pipeline_mode<synchronous>, transform_indices = @transform_9, window_bounds = array<i64: 1, 256>}, {pipeline_mode = #tpu.pipeline_mode<synchronous>, transform_indices = @transform_10, window_bounds = array<i64: 3, 2, 4>}, {pipeline_mode = #tpu.pipeline_mode<synchronous>, transform_indices = @transform_11, window_bounds = array<i64: 3, 256, 10>}, {pipeline_mode = #tpu.pipeline_mode<synchronous>, transform_indices = @transform_12, window_bounds = array<i64: 1, 10>}, {pipeline_mode = #tpu.pipeline_mode<synchronous>, transform_indices = @transform_13, window_bounds = array<i64: 2, 10>}]} {
    %c0 = arith.constant 0 : index
    %c0_0 = arith.constant 0 : index
    %0 = vector.load %arg1[%c0, %c0_0] : memref<32x16xf32, #tpu.memory_space<vmem>>, vector<32x16xf32>
    %c0_1 = arith.constant 0 : index
    %c0_2 = arith.constant 0 : index
    %c0_3 = arith.constant 0 : index
    %1 = vector.load %arg2[%c0_1, %c0_2, %c0_3] : memref<3x16x32xf32, #tpu.memory_space<vmem>>, vector<1x16x32xf32>
    %2 = vector.shape_cast %1 : vector<1x16x32xf32> to vector<16x32xf32>
    %cst = arith.constant dense<0.000000e+00> : vector<16x16xf32>
    %3 = tpu.matmul %2, %0, %cst {dimension_numbers = #tpu.dot_dimension_numbers<[1], [0], [0], [1], [0, 0, 1, 1], [], []>} : vector<16x32xf32>, vector<32x16xf32>, vector<16x16xf32> -> vector<16x16xf32>
    %c0_4 = arith.constant 0 : index
    %c0_5 = arith.constant 0 : index
    %c0_6 = arith.constant 0 : index
    %4 = vector.load %arg3[%c0_4, %c0_5, %c0_6] : memref<3x16x256xf32, #tpu.memory_space<vmem>>, vector<1x16x256xf32>
    %5 = vector.shape_cast %4 : vector<1x16x256xf32> to vector<16x256xf32>
    %cst_7 = arith.constant dense<0.000000e+00> : vector<16x256xf32>
    %6 = tpu.matmul %3, %5, %cst_7 {dimension_numbers = #tpu.dot_dimension_numbers<[1], [0], [0], [1], [0, 0, 1, 1], [], []>} : vector<16x16xf32>, vector<16x256xf32>, vector<16x256xf32> -> vector<16x256xf32>
    %c1 = arith.constant 1 : index
    %c0_8 = arith.constant 0 : index
    %c0_9 = arith.constant 0 : index
    %7 = vector.load %arg2[%c1, %c0_8, %c0_9] : memref<3x16x32xf32, #tpu.memory_space<vmem>>, vector<1x16x32xf32>
    %8 = vector.shape_cast %7 : vector<1x16x32xf32> to vector<16x32xf32>
    %cst_10 = arith.constant dense<0.000000e+00> : vector<16x16xf32>
    %9 = tpu.matmul %8, %0, %cst_10 {dimension_numbers = #tpu.dot_dimension_numbers<[1], [0], [0], [1], [0, 0, 1, 1], [], []>} : vector<16x32xf32>, vector<32x16xf32>, vector<16x16xf32> -> vector<16x16xf32>
    %c1_11 = arith.constant 1 : index
    %c0_12 = arith.constant 0 : index
    %c0_13 = arith.constant 0 : index
    %10 = vector.load %arg3[%c1_11, %c0_12, %c0_13] : memref<3x16x256xf32, #tpu.memory_space<vmem>>, vector<1x16x256xf32>
    %11 = vector.shape_cast %10 : vector<1x16x256xf32> to vector<16x256xf32>
    %cst_14 = arith.constant dense<0.000000e+00> : vector<16x256xf32>
    %12 = tpu.matmul %9, %11, %cst_14 {dimension_numbers = #tpu.dot_dimension_numbers<[1], [0], [0], [1], [0, 0, 1, 1], [], []>} : vector<16x16xf32>, vector<16x256xf32>, vector<16x256xf32> -> vector<16x256xf32>
    %13 = arith.addf %6, %12 : vector<16x256xf32>
    %c2 = arith.constant 2 : index
    %c0_15 = arith.constant 0 : index
    %c0_16 = arith.constant 0 : index
    %14 = vector.load %arg2[%c2, %c0_15, %c0_16] : memref<3x16x32xf32, #tpu.memory_space<vmem>>, vector<1x16x32xf32>
    %15 = vector.shape_cast %14 : vector<1x16x32xf32> to vector<16x32xf32>
    %cst_17 = arith.constant dense<0.000000e+00> : vector<16x16xf32>
    %16 = tpu.matmul %15, %0, %cst_17 {dimension_numbers = #tpu.dot_dimension_numbers<[1], [0], [0], [1], [0, 0, 1, 1], [], []>} : vector<16x32xf32>, vector<32x16xf32>, vector<16x16xf32> -> vector<16x16xf32>
    %c2_18 = arith.constant 2 : index
    %c0_19 = arith.constant 0 : index
    %c0_20 = arith.constant 0 : index
    %17 = vector.load %arg3[%c2_18, %c0_19, %c0_20] : memref<3x16x256xf32, #tpu.memory_space<vmem>>, vector<1x16x256xf32>
    %18 = vector.shape_cast %17 : vector<1x16x256xf32> to vector<16x256xf32>
    %cst_21 = arith.constant dense<0.000000e+00> : vector<16x256xf32>
    %19 = tpu.matmul %16, %18, %cst_21 {dimension_numbers = #tpu.dot_dimension_numbers<[1], [0], [0], [1], [0, 0, 1, 1], [], []>} : vector<16x16xf32>, vector<16x256xf32>, vector<16x256xf32> -> vector<16x256xf32>
    %20 = arith.addf %13, %19 : vector<16x256xf32>
    %c0_22 = arith.constant 0 : index
    %c0_23 = arith.constant 0 : index
    %21 = vector.load %arg4[%c0_22, %c0_23] : memref<1x256xf32, #tpu.memory_space<vmem>>, vector<1x256xf32>
    %22 = vector.broadcast %21 : vector<1x256xf32> to vector<16x256xf32>
    %23 = arith.addf %20, %22 : vector<16x256xf32>
    %cst_24 = arith.constant 0.000000e+00 : f32
    %24 = vector.broadcast %cst_24 : f32 to vector<16x256xf32>
    %25 = arith.maximumf %23, %24 : vector<16x256xf32>
    %c0_25 = arith.constant 0 : index
    %c0_26 = arith.constant 0 : index
    %c0_27 = arith.constant 0 : index
    %26 = vector.load %arg5[%c0_25, %c0_26, %c0_27] : memref<3x8x16xf32, #tpu.memory_space<vmem>>, vector<1x8x16xf32>
    %27 = vector.shape_cast %26 : vector<1x8x16xf32> to vector<8x16xf32>
    %cst_28 = arith.constant dense<0.000000e+00> : vector<8x256xf32>
    %28 = tpu.matmul %27, %25, %cst_28 {dimension_numbers = #tpu.dot_dimension_numbers<[1], [0], [0], [1], [0, 0, 1, 1], [], []>} : vector<8x16xf32>, vector<16x256xf32>, vector<8x256xf32> -> vector<8x256xf32>
    %c0_29 = arith.constant 0 : index
    %c0_30 = arith.constant 0 : index
    %c0_31 = arith.constant 0 : index
    %29 = vector.load %arg6[%c0_29, %c0_30, %c0_31] : memref<3x256x256xbf16, #tpu.memory_space<vmem>>, vector<1x256x256xbf16>
    %30 = vector.shape_cast %29 : vector<1x256x256xbf16> to vector<256x256xbf16>
    %31 = arith.extf %30 : vector<256x256xbf16> to vector<256x256xf32>
    %cst_32 = arith.constant dense<0.000000e+00> : vector<8x256xf32>
    %32 = tpu.matmul %28, %31, %cst_32 {dimension_numbers = #tpu.dot_dimension_numbers<[1], [0], [0], [1], [0, 0, 1, 1], [], []>} : vector<8x256xf32>, vector<256x256xf32>, vector<8x256xf32> -> vector<8x256xf32>
    %c1_33 = arith.constant 1 : index
    %c0_34 = arith.constant 0 : index
    %c0_35 = arith.constant 0 : index
    %33 = vector.load %arg5[%c1_33, %c0_34, %c0_35] : memref<3x8x16xf32, #tpu.memory_space<vmem>>, vector<1x8x16xf32>
    %34 = vector.shape_cast %33 : vector<1x8x16xf32> to vector<8x16xf32>
    %cst_36 = arith.constant dense<0.000000e+00> : vector<8x256xf32>
    %35 = tpu.matmul %34, %25, %cst_36 {dimension_numbers = #tpu.dot_dimension_numbers<[1], [0], [0], [1], [0, 0, 1, 1], [], []>} : vector<8x16xf32>, vector<16x256xf32>, vector<8x256xf32> -> vector<8x256xf32>
    %c1_37 = arith.constant 1 : index
    %c0_38 = arith.constant 0 : index
    %c0_39 = arith.constant 0 : index
    %36 = vector.load %arg6[%c1_37, %c0_38, %c0_39] : memref<3x256x256xbf16, #tpu.memory_space<vmem>>, vector<1x256x256xbf16>
    %37 = vector.shape_cast %36 : vector<1x256x256xbf16> to vector<256x256xbf16>
    %38 = arith.extf %37 : vector<256x256xbf16> to vector<256x256xf32>
    %cst_40 = arith.constant dense<0.000000e+00> : vector<8x256xf32>
    %39 = tpu.matmul %35, %38, %cst_40 {dimension_numbers = #tpu.dot_dimension_numbers<[1], [0], [0], [1], [0, 0, 1, 1], [], []>} : vector<8x256xf32>, vector<256x256xf32>, vector<8x256xf32> -> vector<8x256xf32>
    %40 = arith.addf %32, %39 : vector<8x256xf32>
    %c2_41 = arith.constant 2 : index
    %c0_42 = arith.constant 0 : index
    %c0_43 = arith.constant 0 : index
    %41 = vector.load %arg5[%c2_41, %c0_42, %c0_43] : memref<3x8x16xf32, #tpu.memory_space<vmem>>, vector<1x8x16xf32>
    %42 = vector.shape_cast %41 : vector<1x8x16xf32> to vector<8x16xf32>
    %cst_44 = arith.constant dense<0.000000e+00> : vector<8x256xf32>
    %43 = tpu.matmul %42, %25, %cst_44 {dimension_numbers = #tpu.dot_dimension_numbers<[1], [0], [0], [1], [0, 0, 1, 1], [], []>} : vector<8x16xf32>, vector<16x256xf32>, vector<8x256xf32> -> vector<8x256xf32>
    %c2_45 = arith.constant 2 : index
    %c0_46 = arith.constant 0 : index
    %c0_47 = arith.constant 0 : index
    %44 = vector.load %arg6[%c2_45, %c0_46, %c0_47] : memref<3x256x256xbf16, #tpu.memory_space<vmem>>, vector<1x256x256xbf16>
    %45 = vector.shape_cast %44 : vector<1x256x256xbf16> to vector<256x256xbf16>
    %46 = arith.extf %45 : vector<256x256xbf16> to vector<256x256xf32>
    %cst_48 = arith.constant dense<0.000000e+00> : vector<8x256xf32>
    %47 = tpu.matmul %43, %46, %cst_48 {dimension_numbers = #tpu.dot_dimension_numbers<[1], [0], [0], [1], [0, 0, 1, 1], [], []>} : vector<8x256xf32>, vector<256x256xf32>, vector<8x256xf32> -> vector<8x256xf32>
    %48 = arith.addf %40, %47 : vector<8x256xf32>
    %c0_49 = arith.constant 0 : index
    %c0_50 = arith.constant 0 : index
    %49 = vector.load %arg7[%c0_49, %c0_50] : memref<1x256xf32, #tpu.memory_space<vmem>>, vector<1x256xf32>
    %50 = vector.broadcast %49 : vector<1x256xf32> to vector<8x256xf32>
    %51 = arith.addf %48, %50 : vector<8x256xf32>
    %cst_51 = arith.constant 0.000000e+00 : f32
    %52 = vector.broadcast %cst_51 : f32 to vector<8x256xf32>
    %53 = arith.maximumf %51, %52 : vector<8x256xf32>
    %c0_52 = arith.constant 0 : index
    %c0_53 = arith.constant 0 : index
    %c0_54 = arith.constant 0 : index
    %54 = vector.load %arg8[%c0_52, %c0_53, %c0_54] : memref<3x4x8xf32, #tpu.memory_space<vmem>>, vector<1x4x8xf32>
    %55 = vector.shape_cast %54 : vector<1x4x8xf32> to vector<4x8xf32>
    %cst_55 = arith.constant dense<0.000000e+00> : vector<4x256xf32>
    %56 = tpu.matmul %55, %53, %cst_55 {dimension_numbers = #tpu.dot_dimension_numbers<[1], [0], [0], [1], [0, 0, 1, 1], [], []>} : vector<4x8xf32>, vector<8x256xf32>, vector<4x256xf32> -> vector<4x256xf32>
    %c0_56 = arith.constant 0 : index
    %c0_57 = arith.constant 0 : index
    %c0_58 = arith.constant 0 : index
    %57 = vector.load %arg9[%c0_56, %c0_57, %c0_58] : memref<3x256x256xbf16, #tpu.memory_space<vmem>>, vector<1x256x256xbf16>
    %58 = vector.shape_cast %57 : vector<1x256x256xbf16> to vector<256x256xbf16>
    %59 = arith.extf %58 : vector<256x256xbf16> to vector<256x256xf32>
    %cst_59 = arith.constant dense<0.000000e+00> : vector<4x256xf32>
    %60 = tpu.matmul %56, %59, %cst_59 {dimension_numbers = #tpu.dot_dimension_numbers<[1], [0], [0], [1], [0, 0, 1, 1], [], []>} : vector<4x256xf32>, vector<256x256xf32>, vector<4x256xf32> -> vector<4x256xf32>
    %c1_60 = arith.constant 1 : index
    %c0_61 = arith.constant 0 : index
    %c0_62 = arith.constant 0 : index
    %61 = vector.load %arg8[%c1_60, %c0_61, %c0_62] : memref<3x4x8xf32, #tpu.memory_space<vmem>>, vector<1x4x8xf32>
    %62 = vector.shape_cast %61 : vector<1x4x8xf32> to vector<4x8xf32>
    %cst_63 = arith.constant dense<0.000000e+00> : vector<4x256xf32>
    %63 = tpu.matmul %62, %53, %cst_63 {dimension_numbers = #tpu.dot_dimension_numbers<[1], [0], [0], [1], [0, 0, 1, 1], [], []>} : vector<4x8xf32>, vector<8x256xf32>, vector<4x256xf32> -> vector<4x256xf32>
    %c1_64 = arith.constant 1 : index
    %c0_65 = arith.constant 0 : index
    %c0_66 = arith.constant 0 : index
    %64 = vector.load %arg9[%c1_64, %c0_65, %c0_66] : memref<3x256x256xbf16, #tpu.memory_space<vmem>>, vector<1x256x256xbf16>
    %65 = vector.shape_cast %64 : vector<1x256x256xbf16> to vector<256x256xbf16>
    %66 = arith.extf %65 : vector<256x256xbf16> to vector<256x256xf32>
    %cst_67 = arith.constant dense<0.000000e+00> : vector<4x256xf32>
    %67 = tpu.matmul %63, %66, %cst_67 {dimension_numbers = #tpu.dot_dimension_numbers<[1], [0], [0], [1], [0, 0, 1, 1], [], []>} : vector<4x256xf32>, vector<256x256xf32>, vector<4x256xf32> -> vector<4x256xf32>
    %68 = arith.addf %60, %67 : vector<4x256xf32>
    %c2_68 = arith.constant 2 : index
    %c0_69 = arith.constant 0 : index
    %c0_70 = arith.constant 0 : index
    %69 = vector.load %arg8[%c2_68, %c0_69, %c0_70] : memref<3x4x8xf32, #tpu.memory_space<vmem>>, vector<1x4x8xf32>
    %70 = vector.shape_cast %69 : vector<1x4x8xf32> to vector<4x8xf32>
    %cst_71 = arith.constant dense<0.000000e+00> : vector<4x256xf32>
    %71 = tpu.matmul %70, %53, %cst_71 {dimension_numbers = #tpu.dot_dimension_numbers<[1], [0], [0], [1], [0, 0, 1, 1], [], []>} : vector<4x8xf32>, vector<8x256xf32>, vector<4x256xf32> -> vector<4x256xf32>
    %c2_72 = arith.constant 2 : index
    %c0_73 = arith.constant 0 : index
    %c0_74 = arith.constant 0 : index
    %72 = vector.load %arg9[%c2_72, %c0_73, %c0_74] : memref<3x256x256xbf16, #tpu.memory_space<vmem>>, vector<1x256x256xbf16>
    %73 = vector.shape_cast %72 : vector<1x256x256xbf16> to vector<256x256xbf16>
    %74 = arith.extf %73 : vector<256x256xbf16> to vector<256x256xf32>
    %cst_75 = arith.constant dense<0.000000e+00> : vector<4x256xf32>
    %75 = tpu.matmul %71, %74, %cst_75 {dimension_numbers = #tpu.dot_dimension_numbers<[1], [0], [0], [1], [0, 0, 1, 1], [], []>} : vector<4x256xf32>, vector<256x256xf32>, vector<4x256xf32> -> vector<4x256xf32>
    %76 = arith.addf %68, %75 : vector<4x256xf32>
    %c0_76 = arith.constant 0 : index
    %c0_77 = arith.constant 0 : index
    %77 = vector.load %arg10[%c0_76, %c0_77] : memref<1x256xf32, #tpu.memory_space<vmem>>, vector<1x256xf32>
    %78 = vector.broadcast %77 : vector<1x256xf32> to vector<4x256xf32>
    %79 = arith.addf %76, %78 : vector<4x256xf32>
    %cst_78 = arith.constant 0.000000e+00 : f32
    %80 = vector.broadcast %cst_78 : f32 to vector<4x256xf32>
    %81 = arith.maximumf %79, %80 : vector<4x256xf32>
    %c0_79 = arith.constant 0 : index
    %c0_80 = arith.constant 0 : index
    %c0_81 = arith.constant 0 : index
    %82 = vector.load %arg11[%c0_79, %c0_80, %c0_81] : memref<3x2x4xf32, #tpu.memory_space<vmem>>, vector<1x2x4xf32>
    %83 = vector.shape_cast %82 : vector<1x2x4xf32> to vector<2x4xf32>
    %cst_82 = arith.constant dense<0.000000e+00> : vector<2x256xf32>
    %84 = tpu.matmul %83, %81, %cst_82 {dimension_numbers = #tpu.dot_dimension_numbers<[1], [0], [0], [1], [0, 0, 1, 1], [], []>} : vector<2x4xf32>, vector<4x256xf32>, vector<2x256xf32> -> vector<2x256xf32>
    %c0_83 = arith.constant 0 : index
    %c0_84 = arith.constant 0 : index
    %c0_85 = arith.constant 0 : index
    %85 = vector.load %arg12[%c0_83, %c0_84, %c0_85] : memref<3x256x10xf32, #tpu.memory_space<vmem>>, vector<1x256x10xf32>
    %86 = vector.shape_cast %85 : vector<1x256x10xf32> to vector<256x10xf32>
    %cst_86 = arith.constant dense<0.000000e+00> : vector<2x10xf32>
    %87 = tpu.matmul %84, %86, %cst_86 {dimension_numbers = #tpu.dot_dimension_numbers<[1], [0], [0], [1], [0, 0, 1, 1], [], []>} : vector<2x256xf32>, vector<256x10xf32>, vector<2x10xf32> -> vector<2x10xf32>
    %c1_87 = arith.constant 1 : index
    %c0_88 = arith.constant 0 : index
    %c0_89 = arith.constant 0 : index
    %88 = vector.load %arg11[%c1_87, %c0_88, %c0_89] : memref<3x2x4xf32, #tpu.memory_space<vmem>>, vector<1x2x4xf32>
    %89 = vector.shape_cast %88 : vector<1x2x4xf32> to vector<2x4xf32>
    %cst_90 = arith.constant dense<0.000000e+00> : vector<2x256xf32>
    %90 = tpu.matmul %89, %81, %cst_90 {dimension_numbers = #tpu.dot_dimension_numbers<[1], [0], [0], [1], [0, 0, 1, 1], [], []>} : vector<2x4xf32>, vector<4x256xf32>, vector<2x256xf32> -> vector<2x256xf32>
    %c1_91 = arith.constant 1 : index
    %c0_92 = arith.constant 0 : index
    %c0_93 = arith.constant 0 : index
    %91 = vector.load %arg12[%c1_91, %c0_92, %c0_93] : memref<3x256x10xf32, #tpu.memory_space<vmem>>, vector<1x256x10xf32>
    %92 = vector.shape_cast %91 : vector<1x256x10xf32> to vector<256x10xf32>
    %cst_94 = arith.constant dense<0.000000e+00> : vector<2x10xf32>
    %93 = tpu.matmul %90, %92, %cst_94 {dimension_numbers = #tpu.dot_dimension_numbers<[1], [0], [0], [1], [0, 0, 1, 1], [], []>} : vector<2x256xf32>, vector<256x10xf32>, vector<2x10xf32> -> vector<2x10xf32>
    %94 = arith.addf %87, %93 : vector<2x10xf32>
    %c2_95 = arith.constant 2 : index
    %c0_96 = arith.constant 0 : index
    %c0_97 = arith.constant 0 : index
    %95 = vector.load %arg11[%c2_95, %c0_96, %c0_97] : memref<3x2x4xf32, #tpu.memory_space<vmem>>, vector<1x2x4xf32>
    %96 = vector.shape_cast %95 : vector<1x2x4xf32> to vector<2x4xf32>
    %cst_98 = arith.constant dense<0.000000e+00> : vector<2x256xf32>
    %97 = tpu.matmul %96, %81, %cst_98 {dimension_numbers = #tpu.dot_dimension_numbers<[1], [0], [0], [1], [0, 0, 1, 1], [], []>} : vector<2x4xf32>, vector<4x256xf32>, vector<2x256xf32> -> vector<2x256xf32>
    %c2_99 = arith.constant 2 : index
    %c0_100 = arith.constant 0 : index
    %c0_101 = arith.constant 0 : index
    %98 = vector.load %arg12[%c2_99, %c0_100, %c0_101] : memref<3x256x10xf32, #tpu.memory_space<vmem>>, vector<1x256x10xf32>
    %99 = vector.shape_cast %98 : vector<1x256x10xf32> to vector<256x10xf32>
    %cst_102 = arith.constant dense<0.000000e+00> : vector<2x10xf32>
    %100 = tpu.matmul %97, %99, %cst_102 {dimension_numbers = #tpu.dot_dimension_numbers<[1], [0], [0], [1], [0, 0, 1, 1], [], []>} : vector<2x256xf32>, vector<256x10xf32>, vector<2x10xf32> -> vector<2x10xf32>
    %101 = arith.addf %94, %100 : vector<2x10xf32>
    %c0_103 = arith.constant 0 : index
    %c0_104 = arith.constant 0 : index
    %102 = vector.load %arg13[%c0_103, %c0_104] : memref<1x10xf32, #tpu.memory_space<vmem>>, vector<1x10xf32>
    %103 = vector.broadcast %102 : vector<1x10xf32> to vector<2x10xf32>
    %104 = arith.addf %101, %103 : vector<2x10xf32>
    %c0_105 = arith.constant 0 : index
    %c0_106 = arith.constant 0 : index
    %105 = vector.load %arg14[%c0_105, %c0_106] : memref<2x10xf32, #tpu.memory_space<vmem>>, vector<2x10xf32>
    tpu.vector_store %arg14[%c0_105, %c0_106], %104 {strides = array<i32>} : memref<2x10xf32, #tpu.memory_space<vmem>>, vector<2x10xf32>,
    return
  }
  func.func @transform_0(%arg0: i32) -> (i32, i32) {
    %c0_i32 = arith.constant 0 : i32
    %c0_i32_0 = arith.constant 0 : i32
    %c0_i32_1 = arith.constant 0 : i32
    return %c0_i32, %c0_i32_0 : i32, i32
  }
  func.func @transform_1(%arg0: i32) -> (i32, i32, i32) {
    %c0_i32 = arith.constant 0 : i32
    %c0_i32_0 = arith.constant 0 : i32
    %c0_i32_1 = arith.constant 0 : i32
    %c0_i32_2 = arith.constant 0 : i32
    return %c0_i32, %c0_i32_0, %c0_i32_1 : i32, i32, i32
  }
  func.func @transform_2(%arg0: i32) -> (i32, i32, i32) {
    %c0_i32 = arith.constant 0 : i32
    %c0_i32_0 = arith.constant 0 : i32
    %c0_i32_1 = arith.constant 0 : i32
    %c0_i32_2 = arith.constant 0 : i32
    return %c0_i32, %c0_i32_0, %c0_i32_1 : i32, i32, i32
  }
  func.func @transform_3(%arg0: i32) -> (i32, i32) {
    %c0_i32 = arith.constant 0 : i32
    %c0_i32_0 = arith.constant 0 : i32
    %c0_i32_1 = arith.constant 0 : i32
    return %c0_i32, %c0_i32_0 : i32, i32
  }
  func.func @transform_4(%arg0: i32) -> (i32, i32, i32) {
    %c0_i32 = arith.constant 0 : i32
    %c0_i32_0 = arith.constant 0 : i32
    %c0_i32_1 = arith.constant 0 : i32
    %c0_i32_2 = arith.constant 0 : i32
    return %c0_i32, %c0_i32_0, %c0_i32_1 : i32, i32, i32
  }
  func.func @transform_5(%arg0: i32) -> (i32, i32, i32) {
    %c0_i32 = arith.constant 0 : i32
    %c0_i32_0 = arith.constant 0 : i32
    %c0_i32_1 = arith.constant 0 : i32
    %c0_i32_2 = arith.constant 0 : i32
    return %c0_i32, %c0_i32_0, %c0_i32_1 : i32, i32, i32
  }
  func.func @transform_6(%arg0: i32) -> (i32, i32) {
    %c0_i32 = arith.constant 0 : i32
    %c0_i32_0 = arith.constant 0 : i32
    %c0_i32_1 = arith.constant 0 : i32
    return %c0_i32, %c0_i32_0 : i32, i32
  }
  func.func @transform_7(%arg0: i32) -> (i32, i32, i32) {
    %c0_i32 = arith.constant 0 : i32
    %c0_i32_0 = arith.constant 0 : i32
    %c0_i32_1 = arith.constant 0 : i32
    %c0_i32_2 = arith.constant 0 : i32
    return %c0_i32, %c0_i32_0, %c0_i32_1 : i32, i32, i32
  }
  func.func @transform_8(%arg0: i32) -> (i32, i32, i32) {
    %c0_i32 = arith.constant 0 : i32
    %c0_i32_0 = arith.constant 0 : i32
    %c0_i32_1 = arith.constant 0 : i32
    %c0_i32_2 = arith.constant 0 : i32
    return %c0_i32, %c0_i32_0, %c0_i32_1 : i32, i32, i32
  }
  func.func @transform_9(%arg0: i32) -> (i32, i32) {
    %c0_i32 = arith.constant 0 : i32
    %c0_i32_0 = arith.constant 0 : i32
    %c0_i32_1 = arith.constant 0 : i32
    return %c0_i32, %c0_i32_0 : i32, i32
  }
  func.func @transform_10(%arg0: i32) -> (i32, i32, i32) {
    %c0_i32 = arith.constant 0 : i32
    %c0_i32_0 = arith.constant 0 : i32
    %c0_i32_1 = arith.constant 0 : i32
    %c0_i32_2 = arith.constant 0 : i32
    return %c0_i32, %c0_i32_0, %c0_i32_1 : i32, i32, i32
  }
  func.func @transform_11(%arg0: i32) -> (i32, i32, i32) {
    %c0_i32 = arith.constant 0 : i32
    %c0_i32_0 = arith.constant 0 : i32
    %c0_i32_1 = arith.constant 0 : i32
    %c0_i32_2 = arith.constant 0 : i32
    return %c0_i32, %c0_i32_0, %c0_i32_1 : i32, i32, i32
  }
  func.func @transform_12(%arg0: i32) -> (i32, i32) {
    %c0_i32 = arith.constant 0 : i32
    %c0_i32_0 = arith.constant 0 : i32
    %c0_i32_1 = arith.constant 0 : i32
    return %c0_i32, %c0_i32_0 : i32, i32
  }
  func.func @transform_13(%arg0: i32) -> (i32, i32) {
    %c0_i32 = arith.constant 0 : i32
    %c0_i32_0 = arith.constant 0 : i32
    %c0_i32_1 = arith.constant 0 : i32
    return %c0_i32, %c0_i32_0 : i32, i32
  }
}

</mosaic_0001>

<bundles_post_ra>
// kernel: cnet_forward.1
= control target key start
LH: loop header
LB: loop body
LE: loop exit
PB: predicated region body
PF: predicated region fallthrough
CT: control target
= control target key end

     0   :  { %18 = vsyncpa [#allocation3], 0  ;;  %s5203_s0 = inlined_call_operand.hbm [shape: f32[32,16], index: 0, kind: input, shape index: {}]   ;;  %s5204_s1 = inlined_call_operand.hbm [shape: f32[3,16,32], index: 1, kind: input, shape index: {}]   ;;  %s5205_s2 = inlined_call_operand.vmem [shape: f32[3,16,256], index: 2, kind: input, shape index: {}]   ;;  %s5206_s3 = inlined_call_operand.hbm [shape: f32[1,256], index: 3, kind: input, shape index: {}]   ;;  %s5207_s4 = inlined_call_operand.hbm [shape: f32[3,8,16], index: 4, kind: input, shape index: {}]   ;;  %s5208_s5 = inlined_call_operand.vmem [shape: bf16[3,256,256], index: 5, kind: input, shape index: {}]   ;;  %s5209_s6 = inlined_call_operand.hbm [shape: f32[1,256], index: 6, kind: input, shape index: {}]   ;;  %s5210_s7 = inlined_call_operand.hbm [shape: f32[3,4,8], index: 7, kind: input, shape index: {}]   ;;  %s5211_s8 = inlined_call_operand.hbm [shape: bf16[3,256,256], index: 8, kind: input, shape index: {}]   ;;  %s5212_s9 = inlined_call_operand.vmem [shape: f32[1,256], index: 9, kind: input, shape index: {}]   ;;  %s5213_s10 = inlined_call_operand.vmem [shape: f32[3,2,4], index: 10, kind: input, shape index: {}]   ;;  %s5214_s11 = inlined_call_operand.vmem [shape: f32[3,256,10], index: 11, kind: input, shape index: {}]   ;;  %s5215_s12 = inlined_call_operand.vmem [shape: f32[1,10], index: 12, kind: input, shape index: {}]   ;;  %s5216_s13 = inlined_call_operand.hbm [shape: f32[2,10], index: 13, kind: output, shape index: {}]  }
   0x1   :  { %19 = vsyncpa [#allocation6], 0 }
   0x2   :  { %20 = vsyncpa [#allocation9], 0 }
   0x3   :  { %21 = vsyncpa [#allocation12], 0 }
   0x4   :  { %22 = vsyncpa [#allocation4], 0  ;;  %s4294_s25 = smov [#allocation5]   ;;  %s4295_s27 = smov [#allocation8]  }
   0x5   :  { %s40_s26 = sshll.u32 %s4294_s25, 4  ;;  %s64_s28 = sshll.u32 %s4295_s27, 4  ;;  %s41_s26 = int_to_ptr.vmem [resolvable:$true] %s40_s26  ;;  %s4377_s28 = int_to_ptr.vmem [resolvable:$true] %s64_s28 }
   0x6   :  { %s4108_s14 = scalar_lea.hbm %s5204_s1, 768 }
   0x7   :  { %p4109_p0 = scmp.ne.s32.totalorder %s5204_s1, %s4108_s14  ;;  %p4112_p1 = scmp.lt.u32.totalorder %s4108_s14, %s5204_s1 }
   0x9   :  { %p4114_p2 = pnand %p4112_p1, %p4109_p0 }
   0xb   :  { %4117 = shalt.err (!%p4114_p2)
}
   0xc   :  { %s4118_s19 = scalar_lea.vmem %s41_s26, 768  ;;  %p4123_p4 = scmp.lt.s32.totalorder %s41_s26, %s41_s26 }
   0xd   :  { %p4119_p3 = scmp.ne.s32.totalorder %s41_s26, %s4118_s19  ;;  %p4124_p5 = scmp.lt.s32.totalorder %s4118_s19, %s4118_s19 }
   0xf   :  { %p4125_p6 = por %p4124_p5, %p4123_p4 }
  0x11   :  { %p4126_p7 = pnand %p4125_p6, %p4119_p3 }
  0x13   :  { %4129 = shalt.err (!%p4126_p7)
}
  0x14   :  { %s4296_s20 = smov 128   ;;  %s4297_s21 = smov 8  }
  0x15   :  { %46 = dma.hbm_to_vmem [thread:$0]  %s5204_s1, 768, %s41_s26, [#allocation6], %s4296_s20, %s4296_s20, %s4297_s21  }
  0x16   :  { %s4130_s27 = scalar_lea.hbm %s5207_s4, 384 }
  0x17   :  { %p4131_p8 = scmp.ne.s32.totalorder %s5207_s4, %s4130_s27  ;;  %p4134_p9 = scmp.lt.u32.totalorder %s4130_s27, %s5207_s4 }
  0x19   :  { %p4136_p10 = pnand %p4134_p9, %p4131_p8 }
  0x1b   :  { %4139 = shalt.err (!%p4136_p10)
}
  0x1c   :  { %s4140_s16 = scalar_lea.vmem %s4377_s28, 384  ;;  %p4145_p12 = scmp.lt.s32.totalorder %s4377_s28, %s4377_s28 }
  0x1d   :  { %p4141_p11 = scmp.ne.s32.totalorder %s4377_s28, %s4140_s16  ;;  %p4146_p13 = scmp.lt.s32.totalorder %s4140_s16, %s4140_s16 }
  0x1f   :  { %p4147_p0 = por %p4146_p13, %p4145_p12 }
  0x21   :  { %p4148_p1 = pnand %p4147_p0, %p4141_p11 }
  0x23   :  { %4151 = shalt.err (!%p4148_p1)
}
  0x24   :  { %70 = dma.hbm_to_vmem [thread:$0]  %s5207_s4, 384, %s4377_s28, [#allocation9], %s4296_s20, %s4296_s20, %s4297_s21  }
  0x25   :  { %s4298_s17 = smov [#allocation11]   ;;  %s4152_s23 = scalar_lea.hbm %s5210_s7, 192 }
  0x26   :  { %s88_s18 = sshll.u32 %s4298_s17, 4  ;;  %p4153_p2 = scmp.ne.s32.totalorder %s5210_s7, %s4152_s23  ;;  %s89_s18 = int_to_ptr.vmem [resolvable:$true] %s88_s18 }
  0x27   :  { %p4156_p3 = scmp.lt.u32.totalorder %s4152_s23, %s5210_s7 }
  0x29   :  { %p4158_p4 = pnand %p4156_p3, %p4153_p2 }
  0x2b   :  { %4161 = shalt.err (!%p4158_p4)
}
  0x2c   :  { %s4162_s30 = scalar_lea.vmem %s89_s18, 192  ;;  %p4167_p6 = scmp.lt.s32.totalorder %s89_s18, %s89_s18 }
  0x2d   :  { %p4163_p5 = scmp.ne.s32.totalorder %s89_s18, %s4162_s30  ;;  %p4168_p7 = scmp.lt.s32.totalorder %s4162_s30, %s4162_s30 }
  0x2f   :  { %p4169_p8 = por %p4168_p7, %p4167_p6 }
  0x31   :  { %p4170_p9 = pnand %p4169_p8, %p4163_p5 }
  0x33   :  { %4173 = shalt.err (!%p4170_p9)
}
  0x34   :  { %s4299_s4 = smov 64   ;;  %s4300_s28 = smov 4  }
  0x35   :  { %94 = dma.hbm_to_vmem [thread:$0]  %s5210_s7, 192, %s89_s18, [#allocation12], %s4299_s4, %s4299_s4, %s4300_s28  }
  0x36   :  { %s4301_s16 = smov [#allocation2]   ;;  %s4302_s26 = smov [#allocation7]  }
  0x37   :  { %s28_s1 = sshll.u32 %s4301_s16, 4  ;;  %s55_s17 = sshll.u32 %s4302_s26, 4  ;;  %s29_s1 = int_to_ptr.vmem [resolvable:$true] %s28_s1  ;;  %s56_s17 = int_to_ptr.vmem [resolvable:$true] %s55_s17 }
  0x38   :  { %s4174_s23 = scalar_lea.hbm %s5203_s0, 512 }
  0x39   :  { %p4175_p10 = scmp.ne.s32.totalorder %s5203_s0, %s4174_s23  ;;  %p4178_p11 = scmp.lt.u32.totalorder %s4174_s23, %s5203_s0 }
  0x3b   :  { %p4180_p12 = pnand %p4178_p11, %p4175_p10 }
  0x3d   :  { %4183 = shalt.err (!%p4180_p12)
}
  0x3e   :  { %s4184_s7 = scalar_lea.vmem %s29_s1, 512  ;;  %p4189_p0 = scmp.lt.s32.totalorder %s29_s1, %s29_s1 }
  0x3f   :  { %p4185_p13 = scmp.ne.s32.totalorder %s29_s1, %s4184_s7  ;;  %p4190_p1 = scmp.lt.s32.totalorder %s4184_s7, %s4184_s7 }
  0x41   :  { %p4191_p2 = por %p4190_p1, %p4189_p0 }
  0x43   :  { %p4192_p3 = pnand %p4191_p2, %p4185_p13 }
  0x45   :  { %4195 = shalt.err (!%p4192_p3)
}
  0x46   :  { %34 = dma.hbm_to_vmem [thread:$0]  %s5203_s0, 512, %s29_s1, [#allocation3], %s4296_s20, %s4296_s20, %s4297_s21  }
  0x47   :  { %s4196_s14 = scalar_lea.hbm %s5206_s3, 32 }
  0x48   :  { %p4197_p4 = scmp.ne.s32.totalorder %s5206_s3, %s4196_s14  ;;  %p4200_p5 = scmp.lt.u32.totalorder %s4196_s14, %s5206_s3 }
  0x4a   :  { %p4202_p6 = pnand %p4200_p5, %p4197_p4 }
  0x4c   :  { %4205 = shalt.err (!%p4202_p6)
}
  0x4d   :  { %s4206_s22 = scalar_lea.vmem %s56_s17, 32  ;;  %p4211_p8 = scmp.lt.s32.totalorder %s56_s17, %s56_s17 }
  0x4e   :  { %p4207_p7 = scmp.ne.s32.totalorder %s56_s17, %s4206_s22  ;;  %p4212_p9 = scmp.lt.s32.totalorder %s4206_s22, %s4206_s22 }
  0x50   :  { %p4213_p10 = por %p4212_p9, %p4211_p8 }
  0x52   :  { %p4214_p11 = pnand %p4213_p10, %p4207_p7 }
  0x54   :  { %4217 = shalt.err (!%p4214_p11)
}
  0x55   :  { %58 = dma.hbm_to_vmem [thread:$0]  %s5206_s3, 32, %s56_s17, [#allocation6]  }
  0x56   :  { %s4303_s23 = smov [#allocation10]   ;;  %s4304_s25 = smov [#allocation13]  }
  0x57   :  { %s79_s24 = sshll.u32 %s4303_s23, 4  ;;  %s100_s27 = sshll.u32 %s4304_s25, 4  ;;  %s80_s24 = int_to_ptr.vmem [resolvable:$true] %s79_s24  ;;  %s101_s27 = int_to_ptr.vmem [resolvable:$true] %s100_s27 }
  0x58   :  { %s4218_s18 = scalar_lea.hbm %s5209_s6, 32 }
  0x59   :  { %p4219_p12 = scmp.ne.s32.totalorder %s5209_s6, %s4218_s18  ;;  %p4222_p13 = scmp.lt.u32.totalorder %s4218_s18, %s5209_s6 }
  0x5b   :  { %p4224_p0 = pnand %p4222_p13, %p4219_p12 }
  0x5d   :  { %4227 = shalt.err (!%p4224_p0)
}
  0x5e   :  { %s4228_s3 = scalar_lea.vmem %s80_s24, 32  ;;  %p4233_p2 = scmp.lt.s32.totalorder %s80_s24, %s80_s24 }
  0x5f   :  { %p4229_p1 = scmp.ne.s32.totalorder %s80_s24, %s4228_s3  ;;  %p4234_p3 = scmp.lt.s32.totalorder %s4228_s3, %s4228_s3 }
  0x61   :  { %p4235_p4 = por %p4234_p3, %p4233_p2 }
  0x63   :  { %p4236_p5 = pnand %p4235_p4, %p4229_p1 }
  0x65   :  { %4239 = shalt.err (!%p4236_p5)
}
  0x66   :  { %82 = dma.hbm_to_vmem [thread:$0]  %s5209_s6, 32, %s80_s24, [#allocation9]  }
  0x67   :  { %s4240_s19 = scalar_lea.hbm %s5211_s8, 12288 }
  0x68   :  { %p4241_p6 = scmp.ne.s32.totalorder %s5211_s8, %s4240_s19  ;;  %p4244_p7 = scmp.lt.u32.totalorder %s4240_s19, %s5211_s8 }
  0x6a   :  { %p4246_p8 = pnand %p4244_p7, %p4241_p6 }
  0x6c   :  { %4249 = shalt.err (!%p4246_p8)
}
  0x6d   :  { %s4250_s25 = scalar_lea.vmem %s101_s27, 12288  ;;  %p4255_p10 = scmp.lt.s32.totalorder %s101_s27, %s101_s27 }
  0x6e   :  { %p4251_p9 = scmp.ne.s32.totalorder %s101_s27, %s4250_s25  ;;  %p4256_p11 = scmp.lt.s32.totalorder %s4250_s25, %s4250_s25 }
  0x70   :  { %p4257_p12 = por %p4256_p11, %p4255_p10 }
  0x72   :  { %p4258_p13 = pnand %p4257_p12, %p4251_p9 }
  0x74   :  { %4261 = shalt.err (!%p4258_p13)
}
  0x75   :  { %106 = dma.hbm_to_vmem [thread:$0]  %s5211_s8, 12288, %s101_s27, [#allocation12], %s4296_s20, %s4296_s20, %s4297_s21  }
  0x76   :  { %4284 = dma.done.wait [#allocation3], 512  }
  0x77   :  { %4285 = vsyncadd [#allocation3], 4294966784 }
  0x78   :  { %4286 = dma.done.wait [#allocation6], 800  }
  0x79   :  { %4287 = vsyncadd [#allocation6], 4294966496 }
  0x7a   :  { %4288 = dma.done.wait [#allocation9], 416  }
  0x7b   :  { %4289 = vsyncadd [#allocation9], 4294966880 }
  0x7c   :  { %4290 = dma.done.wait [#allocation12], 12480  }
  0x7d   :  { %4291 = vsyncadd [#allocation12], 4294954816  ;;  %vm142_vm0 = vcmask 261120   ;;  %v136_v0 = vld [vmem:[#allocation2] sm:$0xff]  ;;  %v137_v1 = vld [vmem:[#allocation2 + $0x8] sm:$0xff]  ;;  %v4305_v18 = vmov 0.0   ;;  %v662_v37 = vlaneseq }
  0x7e   :  { %v138_v2 = vld [vmem:[#allocation2 + $0x10] sm:$0xff]  ;;  %v3071_v3 = vpack.c.bf16 %v137_v1, %v136_v0  ;;  %v139_v4 = vld [vmem:[#allocation2 + $0x18] sm:$0xff]  ;;  %v140_v5 = vld [vmem:[#allocation5] sm:$0xff]  ;;  %vm317_vm1 = vcmask 130048   ;;  %vm1429_vm2 = vcmask 64512   ;;  %vm2182_vm3 = vcmask 1043456  }
  0x7f   :  { %v3075_v6 = vpack.c.bf16 %v139_v4, %v138_v2  ;;  %3046 = vmatprep.mubr.msk.f32.mxu0 %vm142_vm0, %v140_v5  ;;  %v485_v7 = vld [vmem:[#allocation5 + $0x20] sm:$0xff]  ;;  %v141_v8 = vld [vmem:[#allocation5 + $0x8] sm:$0xff]  ;;  %v229_v10 = vld [vmem:[#allocation5 + $0x10] sm:$0xff]  ;;  %v663_v38 = vshrl.u32 %v662_v37, 7  ;;  %vm2178_vm4 = vcmask 31744   ;;  %vm2729_vm5 = vcmask 74752  }
  0x80   :  { %3072 = vmatprep.subr.bf16.mxu0 %v3071_v3  ;;  %3096 = vmatprep.subr.bf16.mxu1 %v3071_v3  ;;  %v486_v9 = vld [vmem:[#allocation5 + $0x28] sm:$0xff]  ;;  %v230_v11 = vld [vmem:[#allocation5 + $0x18] sm:$0xff]  ;;  %v2753_v14 = vld [vmem:[%s5205_s2 + $0x20] sm:$0xff] }
  0x81   :  { %3074 = vmatpush3.bf16.msra.mxu0 %v3071_v3  ;;  %3098 = vmatpush3.bf16.msra.mxu1 %v3071_v3  ;;  %v2754_v12 = vld [vmem:[%s5205_s2 + $0x28] sm:$0xff]  ;;  %v2756_v13 = vld [vmem:[%s5205_s2 + $0x38] sm:$0xff]  ;;  %v2755_v16 = vld [vmem:[%s5205_s2 + $0x30] sm:$0xff]  ;;  %v4536_v39 = vsub.s32 0, %v663_v38  ;;  %v4538_v41 = vsub.s32 1, %v663_v38 }
  0x82   :  { %3076 = vmatprep.subr.bf16.mxu0 %v3075_v6  ;;  %3100 = vmatprep.subr.bf16.mxu1 %v3075_v6  ;;  %v3087_v15 = vpack.c.bf16 %v2756_v13, %v2754_v12  ;;  %v3089_v17 = vpack.c.bf16 %v2755_v16, %v2753_v14  ;;  %v225_v19 = vld [vmem:[%s5205_s2 + $0x8] sm:$0xff]  ;;  %v227_v20 = vld [vmem:[%s5205_s2 + $0x18] sm:$0xff]  ;;  %v224_v26 = vld [vmem:[%s5205_s2] sm:$0xff] }
  0x83   :  { %3068 = vmatprep.mubr.msk.f32.mxu1 %vm142_vm0, %v485_v7  ;;  %v3091_v21 = vpack.c.bf16 %v227_v20, %v225_v19  ;;  %v226_v27 = vld [vmem:[%s5205_s2 + $0x10] sm:$0xff]  ;;  %v2764_v28 = vld [vmem:[%s5205_s2 + $0x48] sm:$0xff]  ;;  %v2766_v29 = vld [vmem:[%s5205_s2 + $0x58] sm:$0xff] }
  0x84   :  { %v3093_v30 = vpack.c.bf16 %v226_v27, %v224_v26  ;;  %v3103_v32 = vpack.c.bf16 %v2766_v29, %v2764_v28  ;;  %v2763_v34 = vld [vmem:[%s5205_s2 + $0x40] sm:$0xff]  ;;  %v2765_v35 = vld [vmem:[%s5205_s2 + $0x50] sm:$0xff] }
  0x85   :  { %3078 = vmatpush3.bf16.msra.mxu0 %v3075_v6  ;;  %3102 = vmatpush3.bf16.msra.mxu1 %v3075_v6  ;;  %v3105_v36 = vpack.c.bf16 %v2765_v35, %v2763_v34  ;;  %v660_v40 = vld [vmem:[#allocation7] sm:$0x3]  ;;  %v680_v58 = vld [vmem:[#allocation8] sm:$0xff]  ;;  %v1167_v59 = vld [vmem:[#allocation8 + $0x10] sm:$0xff] }
  0x86   :  { %3080 = vmatprep.subr.bf16.mxu0 %v3071_v3  ;;  %v665_v42 = vrot.slane %v660_v40, %v4536_v39  ;;  %v669_v44 = vrot.slane %v660_v40, %v4538_v41  ;;  %v3820_v60 = vld [vmem:[%s5208_s5 + $0x104] ss:$8 sps:$4 sm:$0xff]   ;;  %v852_v61 = vld [vmem:[#allocation8 + $0x8] sm:$0xff] }
  0x87   :  { %v3822_v62 = vld [vmem:[%s5208_s5 + $0x100] ss:$8 sps:$4 sm:$0xff]   ;;  %v3823_v63 = vld [vmem:[%s5208_s5 + $0x114] ss:$8 sps:$4 sm:$0xff]   ;;  %v3825_v0 = vld [vmem:[%s5208_s5 + $0x110] ss:$8 sps:$4 sm:$0xff]  }
  0x88   :  { %3047 = vmatmul.mubr.msk.f32.vlgmr.msra.gmra.mrb[0].mxu0 %vm142_vm0, %v141_v8  ;;  %3069 = vmatmul.mubr.msk.f32.vlgmr.msra.gmra.mrb[0].mxu1 %vm142_vm0, %v486_v9  ;;  %v3826_v1 = vld [vmem:[%s5208_s5 + $0x124] ss:$8 sps:$4 sm:$0xff]   ;;  %v3828_v2 = vld [vmem:[%s5208_s5 + $0x120] ss:$8 sps:$4 sm:$0xff]   ;;  %v3831_v4 = vld [vmem:[%s5208_s5 + $0x130] ss:$8 sps:$4 sm:$0xff]  }
  0x89   :  { %3082 = vmatpush3.bf16.msra.mxu0 %v3071_v3  ;;  %3057 = vmatprep.mubr.msk.f32.mxu0 %vm142_vm0, %v229_v10  ;;  %v3829_v3 = vld [vmem:[%s5208_s5 + $0x134] ss:$8 sps:$4 sm:$0xff]   ;;  %v3832_v5 = vld [vmem:[%s5208_s5 + $0x144] ss:$8 sps:$4 sm:$0xff]   ;;  %v3837_v8 = vld [vmem:[%s5208_s5 + $0x150] ss:$8 sps:$4 sm:$0xff]  }
  0x8a   :  { %3084 = vmatprep.subr.bf16.mxu0 %v3075_v6  ;;  %748 = vmatprep.mubr.f32.mxu1 %v4305_v18  ;;  %v3835_v7 = vld [vmem:[%s5208_s5 + $0x154] ss:$8 sps:$4 sm:$0xff]   ;;  %v3838_v9 = vld [vmem:[%s5208_s5 + $0x164] ss:$8 sps:$4 sm:$0xff]   ;;  %v3840_v10 = vld [vmem:[%s5208_s5 + $0x160] ss:$8 sps:$4 sm:$0xff]  }
  0x8b   :  { %v3843_v12 = vld [vmem:[%s5208_s5 + $0x170] ss:$8 sps:$4 sm:$0xff]   ;;  %v3844_v13 = vld [vmem:[%s5208_s5 + $0x184] ss:$8 sps:$4 sm:$0xff]   ;;  %v3846_v14 = vld [vmem:[%s5208_s5 + $0x180] ss:$8 sps:$4 sm:$0xff]  }
  0x8c   :  { %v3849_v16 = vld [vmem:[%s5208_s5 + $0x190] ss:$8 sps:$4 sm:$0xff]   ;;  %v3852_v19 = vld [vmem:[%s5208_s5 + $0x1a0] ss:$8 sps:$4 sm:$0xff]   ;;  %v3853_v20 = vld [vmem:[%s5208_s5 + $0x1b4] ss:$8 sps:$4 sm:$0xff]  }
  0x8d   :  { %3086 = vmatpush3.bf16.msra.mxu0 %v3075_v6  ;;  %v3834_v6 = vld [vmem:[%s5208_s5 + $0x140] ss:$8 sps:$4 sm:$0xff]   ;;  %v3862_v26 = vld [vmem:[%s5208_s5 + $0x1e4] ss:$8 sps:$4 sm:$0xff]   ;;  %v3865_v28 = vld [vmem:[%s5208_s5 + $0x1f4] ss:$8 sps:$4 sm:$0xff]  }
  0x8e   :  { %3088 = vmatprep.subr.bf16.mxu0 %v3087_v15  ;;  %v3847_v15 = vld [vmem:[%s5208_s5 + $0x194] ss:$8 sps:$4 sm:$0xff]   ;;  %v3864_v27 = vld [vmem:[%s5208_s5 + $0x1e0] ss:$8 sps:$4 sm:$0xff]   ;;  %v3867_v29 = vld [vmem:[%s5208_s5 + $0x1f0] ss:$8 sps:$4 sm:$0xff]  }
  0x8f   :  { %v3871_v38 = vld [vmem:[%s5208_s5 + $0x14] ss:$8 sps:$4 sm:$0xff]   ;;  %v3873_v40 = vld [vmem:[%s5208_s5 + $0x10] ss:$8 sps:$4 sm:$0xff]  }
  0x90   :  { %3058 = vmatmul.mubr.msk.f32.vlgmr.msra.gmra.mrb[2].mxu0 %vm142_vm0, %v230_v11  ;;  %v3841_v11 = vld [vmem:[%s5208_s5 + $0x174] ss:$8 sps:$4 sm:$0xff]  }
  0x91   :  { %3090 = vmatpush1.bf16.msra.mxu0 %v3089_v17  ;;  %388 = vmatprep.mubr.f32.mxu0 %v4305_v18  ;;  %v3850_v17 = vld [vmem:[%s5208_s5 + $0x1a4] ss:$8 sps:$4 sm:$0xff]  }
  0x92   :  { %3092 = vmatprep.subr.bf16.mxu0 %v3091_v21  ;;  %v3855_v21 = vld [vmem:[%s5208_s5 + $0x1b0] ss:$8 sps:$4 sm:$0xff]  }
 0x15b   :  { %v3048_v22 = vpop.f32.mrb[0].mxu0  ;;  %v3070_v23 = vpop.f32.mrb[0].mxu1 }
 0x15c   :  { %v215_v24 = vpop.f32.mrb[1].mxu0  ;;  %v559_v25 = vpop.f32.mrb[1].mxu1 }
 0x163   :  { %v3059_v31 = vpop.f32.mrb[2].mxu0 }
 0x164   :  { %v303_v33 = vpop.f32.mrb[3].mxu0 }
 0x165   :  { %2757 = vmatmul.mubr.msk.f32.vlgmr.msra.gmra.mrb[4].mxu0 %vm317_vm1, %v303_v33 }
 0x166   :  { %394 = vmatprep.mubr.f32.mxu0 %v4305_v18  ;;  %3094 = vmatpush1.bf16.msra.mxu0 %v3093_v30  ;;  %v3868_v30 = vld [vmem:[%s5208_s5 + $0x4] ss:$8 sps:$4 sm:$0xff]  }
 0x167   :  { %3104 = vmatprep.subr.bf16.mxu0 %v3103_v32 }
 0x169   :  { %2758 = vmatmul.mubr.msk.f32.gmra.mrb[6].mxu0 %vm317_vm1, %v3059_v31 }
 0x16a   :  { %471 = vmatprep.mubr.f32.mxu0 %v4305_v18 }
 0x16d   :  { %2759 = vmatmul.mubr.msk.f32.vlgmr.msra.gmra.mrb[4].mxu0 %vm317_vm1, %v215_v24  ;;  %v3859_v24 = vld [vmem:[%s5208_s5 + $0x1d4] ss:$8 sps:$4 sm:$0xff]  }
 0x16e   :  { %477 = vmatprep.mubr.f32.mxu0 %v4305_v18  ;;  %3106 = vmatpush1.bf16.msra.mxu0 %v3105_v36  ;;  %v3870_v36 = vld [vmem:[%s5208_s5] ss:$8 sps:$4 sm:$0xff]  }
 0x171   :  { %2760 = vmatmul.mubr.msk.f32.gmra.mrb[6].mxu0 %vm317_vm1, %v3048_v22  ;;  %v3856_v22 = vld [vmem:[%s5208_s5 + $0x1c4] ss:$8 sps:$4 sm:$0xff]  }
 0x172   :  { %643 = vmatprep.mubr.f32.mxu0 %v4305_v18 }
 0x175   :  { %2767 = vmatmul.mubr.msk.f32.vlgmr.msra.gmra.mrb[4].mxu0 %vm317_vm1, %v559_v25  ;;  %v3861_v25 = vld [vmem:[%s5208_s5 + $0x1d0] ss:$8 sps:$4 sm:$0xff]  }
 0x176   :  { %649 = vmatprep.mubr.f32.mxu0 %v4305_v18 }
 0x179   :  { %2768 = vmatmul.mubr.msk.f32.gmra.mrb[6].mxu0 %vm317_vm1, %v3070_v23  ;;  %v3858_v23 = vld [vmem:[%s5208_s5 + $0x1c0] ss:$8 sps:$4 sm:$0xff]  }
 0x17a   :  { %1235 = vmatprep.mubr.f32.mxu0 %v4305_v18 }
 0x248   :  { %v645_v43 = vpop.f32.mrb[4].mxu0 }
 0x249   :  { %v647_v45 = vpop.f32.mrb[5].mxu0  ;;  %v672_v46 = vadd.f32 %v665_v42, %v645_v43  ;;  %v3876_v43 = vld [vmem:[%s5208_s5 + $0x20] ss:$8 sps:$4 sm:$0xff]  }
 0x24a   :  { %v673_v47 = vadd.f32 %v669_v44, %v647_v45  ;;  %v3879_v45 = vld [vmem:[%s5208_s5 + $0x30] ss:$8 sps:$4 sm:$0xff]  }
 0x24b   :  { %v676_v52 = vmax.f32 %v672_v46, 0.0  ;;  %v3880_v46 = vld [vmem:[%s5208_s5 + $0x44] ss:$8 sps:$4 sm:$0xff]  }
 0x24c   :  { %v651_v48 = vpop.f32.mrb[6].mxu0  ;;  %v677_v54 = vmax.f32 %v673_v47, 0.0  ;;  %v3882_v47 = vld [vmem:[%s5208_s5 + $0x40] ss:$8 sps:$4 sm:$0xff]  }
 0x24d   :  { %v674_v49 = vadd.f32 %v665_v42, %v651_v48  ;;  %v653_v50 = vpop.f32.mrb[7].mxu0  ;;  %v3874_v42 = vld [vmem:[%s5208_s5 + $0x24] ss:$8 sps:$4 sm:$0xff]   ;;  %v3883_v48 = vld [vmem:[%s5208_s5 + $0x54] ss:$8 sps:$4 sm:$0xff]  }
 0x24e   :  { %v675_v51 = vadd.f32 %v669_v44, %v653_v50  ;;  %v3877_v44 = vld [vmem:[%s5208_s5 + $0x34] ss:$8 sps:$4 sm:$0xff]   ;;  %v3886_v50 = vld [vmem:[%s5208_s5 + $0x64] ss:$8 sps:$4 sm:$0xff]  }
 0x24f   :  { %v678_v53 = vmax.f32 %v674_v49, 0.0  ;;  %v3885_v49 = vld [vmem:[%s5208_s5 + $0x50] ss:$8 sps:$4 sm:$0xff]  }
 0x250   :  { %v679_v55 = vmax.f32 %v675_v51, 0.0  ;;  %v3888_v51 = vld [vmem:[%s5208_s5 + $0x60] ss:$8 sps:$4 sm:$0xff]  }
 0x251   :  { %v3109_v56 = vpack.c.bf16 %v678_v53, %v676_v52  ;;  %v3889_v52 = vld [vmem:[%s5208_s5 + $0x74] ss:$8 sps:$4 sm:$0xff]   ;;  %v3891_v53 = vld [vmem:[%s5208_s5 + $0x70] ss:$8 sps:$4 sm:$0xff]  }
 0x252   :  { %v3107_v57 = vpack.c.bf16 %v679_v55, %v677_v54  ;;  %v3892_v54 = vld [vmem:[%s5208_s5 + $0x84] ss:$8 sps:$4 sm:$0xff]   ;;  %v3894_v55 = vld [vmem:[%s5208_s5 + $0x80] ss:$8 sps:$4 sm:$0xff]  }
 0x254   :  { %3108 = vmatprep.subr.bf16.mxu1 %v3107_v57  ;;  %3244 = vmatprep.subr.bf16.mxu0 %v3107_v57 }
 0x255   :  { %3110 = vmatpush1.bf16.msra.mxu1 %v3109_v56  ;;  %3246 = vmatpush1.bf16.msra.mxu0 %v3109_v56 }
 0x256   :  { %3112 = vmatprep.subr.bf16.mxu1 %v3107_v57  ;;  %v3897_v57 = vld [vmem:[%s5208_s5 + $0x90] ss:$8 sps:$4 sm:$0xff]  }
 0x258   :  { %2769 = vmatmul.mubr.msk.f32.vlgmr.msra.gmra.mrb[2].mxu1 %vm317_vm1, %v680_v58  ;;  %2803 = vmatmul.mubr.msk.f32.vlgmr.msra.gmra.mrb[8].mxu0 %vm317_vm1, %v1167_v59  ;;  %v3898_v58 = vld [vmem:[%s5208_s5 + $0xa4] ss:$8 sps:$4 sm:$0xff]   ;;  %v3900_v59 = vld [vmem:[%s5208_s5 + $0xa0] ss:$8 sps:$4 sm:$0xff]  }
 0x259   :  { %3114 = vmatpush1.bf16.msra.mxu1 %v3109_v56  ;;  %920 = vmatprep.mubr.f32.mxu1 %v4305_v18  ;;  %v3895_v56 = vld [vmem:[%s5208_s5 + $0x94] ss:$8 sps:$4 sm:$0xff]  }
 0x25a   :  { %3116 = vmatprep.subr.bf16.mxu1 %v3820_v60  ;;  %1497 = vmatprep.mubr.f32.mxu0 %v4305_v18  ;;  %v3901_v60 = vld [vmem:[%s5208_s5 + $0xb4] ss:$8 sps:$4 sm:$0xff]  }
 0x25c   :  { %2770 = vmatmul.mubr.msk.f32.vlgmr.msra.gmra.mrb[4].mxu1 %vm317_vm1, %v852_v61  ;;  %v3903_v61 = vld [vmem:[%s5208_s5 + $0xb0] ss:$8 sps:$4 sm:$0xff]  }
 0x25d   :  { %3118 = vmatpush1.bf16.msra.mxu1 %v3822_v62  ;;  %v3904_v62 = vld [vmem:[%s5208_s5 + $0xc4] ss:$8 sps:$4 sm:$0xff]  }
 0x25e   :  { %3120 = vmatprep.subr.bf16.mxu1 %v3823_v63  ;;  %v3906_v63 = vld [vmem:[%s5208_s5 + $0xc0] ss:$8 sps:$4 sm:$0xff]  }
 0x261   :  { %3122 = vmatpush1.bf16.msra.mxu1 %v3825_v0  ;;  %v3907_v0 = vld [vmem:[%s5208_s5 + $0xd4] ss:$8 sps:$4 sm:$0xff]  }
 0x262   :  { %3124 = vmatprep.subr.bf16.mxu1 %v3826_v1  ;;  %v3909_v1 = vld [vmem:[%s5208_s5 + $0xd0] ss:$8 sps:$4 sm:$0xff]  }
 0x265   :  { %3126 = vmatpush1.bf16.msra.mxu1 %v3828_v2  ;;  %v3910_v2 = vld [vmem:[%s5208_s5 + $0xe4] ss:$8 sps:$4 sm:$0xff]  }
 0x266   :  { %3128 = vmatprep.subr.bf16.mxu1 %v3829_v3  ;;  %v3912_v3 = vld [vmem:[%s5208_s5 + $0xe0] ss:$8 sps:$4 sm:$0xff]  }
 0x269   :  { %3130 = vmatpush1.bf16.msra.mxu1 %v3831_v4  ;;  %v3913_v4 = vld [vmem:[%s5208_s5 + $0xf4] ss:$8 sps:$4 sm:$0xff]  }
 0x26a   :  { %3132 = vmatprep.subr.bf16.mxu1 %v3832_v5  ;;  %v3915_v5 = vld [vmem:[%s5208_s5 + $0xf0] ss:$8 sps:$4 sm:$0xff]  }
 0x26d   :  { %3134 = vmatpush1.bf16.msra.mxu1 %v3834_v6  ;;  %v3916_v6 = vld [vmem:[%s5208_s5 + $0x204] ss:$8 sps:$4 sm:$0xff]  }
 0x26e   :  { %3136 = vmatprep.subr.bf16.mxu1 %v3835_v7  ;;  %v3918_v7 = vld [vmem:[%s5208_s5 + $0x200] ss:$8 sps:$4 sm:$0xff]  }
 0x271   :  { %3138 = vmatpush1.bf16.msra.mxu1 %v3837_v8  ;;  %v3919_v8 = vld [vmem:[%s5208_s5 + $0x214] ss:$8 sps:$4 sm:$0xff]  }
 0x272   :  { %3140 = vmatprep.subr.bf16.mxu1 %v3838_v9  ;;  %v3921_v9 = vld [vmem:[%s5208_s5 + $0x210] ss:$8 sps:$4 sm:$0xff]  }
 0x275   :  { %3142 = vmatpush1.bf16.msra.mxu1 %v3840_v10  ;;  %v3922_v10 = vld [vmem:[%s5208_s5 + $0x224] ss:$8 sps:$4 sm:$0xff]  }
 0x276   :  { %3144 = vmatprep.subr.bf16.mxu1 %v3841_v11  ;;  %v3924_v11 = vld [vmem:[%s5208_s5 + $0x220] ss:$8 sps:$4 sm:$0xff]  }
 0x279   :  { %3146 = vmatpush1.bf16.msra.mxu1 %v3843_v12  ;;  %v3925_v12 = vld [vmem:[%s5208_s5 + $0x234] ss:$8 sps:$4 sm:$0xff]  }
 0x27a   :  { %3148 = vmatprep.subr.bf16.mxu1 %v3844_v13  ;;  %v3927_v13 = vld [vmem:[%s5208_s5 + $0x230] ss:$8 sps:$4 sm:$0xff]  }
 0x27d   :  { %3150 = vmatpush1.bf16.msra.mxu1 %v3846_v14  ;;  %v3928_v14 = vld [vmem:[%s5208_s5 + $0x244] ss:$8 sps:$4 sm:$0xff]  }
 0x27e   :  { %3152 = vmatprep.subr.bf16.mxu1 %v3847_v15  ;;  %v3930_v15 = vld [vmem:[%s5208_s5 + $0x240] ss:$8 sps:$4 sm:$0xff]  }
 0x281   :  { %3154 = vmatpush1.bf16.msra.mxu1 %v3849_v16  ;;  %v3931_v16 = vld [vmem:[%s5208_s5 + $0x254] ss:$8 sps:$4 sm:$0xff]  }
 0x282   :  { %3156 = vmatprep.subr.bf16.mxu1 %v3850_v17  ;;  %v3933_v17 = vld [vmem:[%s5208_s5 + $0x250] ss:$8 sps:$4 sm:$0xff]  }
 0x285   :  { %3158 = vmatpush1.bf16.msra.mxu1 %v3852_v19  ;;  %v3934_v19 = vld [vmem:[%s5208_s5 + $0x264] ss:$8 sps:$4 sm:$0xff]  }
 0x286   :  { %3160 = vmatprep.subr.bf16.mxu1 %v3853_v20  ;;  %v3936_v20 = vld [vmem:[%s5208_s5 + $0x260] ss:$8 sps:$4 sm:$0xff]  }
 0x289   :  { %3162 = vmatpush1.bf16.msra.mxu1 %v3855_v21  ;;  %v3937_v21 = vld [vmem:[%s5208_s5 + $0x274] ss:$8 sps:$4 sm:$0xff]  }
 0x28a   :  { %3164 = vmatprep.subr.bf16.mxu1 %v3856_v22  ;;  %v3939_v22 = vld [vmem:[%s5208_s5 + $0x270] ss:$8 sps:$4 sm:$0xff]  }
 0x28d   :  { %3166 = vmatpush1.bf16.msra.mxu1 %v3858_v23  ;;  %v3940_v23 = vld [vmem:[%s5208_s5 + $0x284] ss:$8 sps:$4 sm:$0xff]  }
 0x28e   :  { %3168 = vmatprep.subr.bf16.mxu1 %v3859_v24  ;;  %v3942_v24 = vld [vmem:[%s5208_s5 + $0x280] ss:$8 sps:$4 sm:$0xff]  }
 0x291   :  { %3170 = vmatpush1.bf16.msra.mxu1 %v3861_v25  ;;  %v3943_v25 = vld [vmem:[%s5208_s5 + $0x294] ss:$8 sps:$4 sm:$0xff]  }
 0x292   :  { %3172 = vmatprep.subr.bf16.mxu1 %v3862_v26  ;;  %v3945_v26 = vld [vmem:[%s5208_s5 + $0x290] ss:$8 sps:$4 sm:$0xff]  }
 0x295   :  { %3174 = vmatpush1.bf16.msra.mxu1 %v3864_v27  ;;  %v3946_v27 = vld [vmem:[%s5208_s5 + $0x2a4] ss:$8 sps:$4 sm:$0xff]  }
 0x296   :  { %3176 = vmatprep.subr.bf16.mxu1 %v3865_v28  ;;  %v3948_v28 = vld [vmem:[%s5208_s5 + $0x2a0] ss:$8 sps:$4 sm:$0xff]  }
 0x299   :  { %3178 = vmatpush1.bf16.msra.mxu1 %v3867_v29  ;;  %v3949_v29 = vld [vmem:[%s5208_s5 + $0x2b4] ss:$8 sps:$4 sm:$0xff]  }
 0x29a   :  { %3180 = vmatprep.subr.bf16.mxu1 %v3868_v30  ;;  %v3951_v30 = vld [vmem:[%s5208_s5 + $0x2b0] ss:$8 sps:$4 sm:$0xff]  }
 0x32b   :  { %v4646_v31 = vpop.f32.mrb[2].mxu1  ;;  %v4648_v32 = vpop.f32.mrb[8].mxu0 }
 0x32c   :  { %v752_v33 = vpop.f32.mrb[3].mxu1  ;;  %v4650_v34 = vpop.f32.mrb[9].mxu0 }
 0x32f   :  { %v922_v35 = vpop.f32.mrb[4].mxu1 }
 0x330   :  { %v924_v37 = vpop.f32.mrb[5].mxu1 }
 0x331   :  { %1088 = vmatprep.mubr.f32.mxu1 %v924_v37  ;;  %v3960_v37 = vld [vmem:[%s5208_s5 + $0x2e0] ss:$8 sps:$4 sm:$0xff]  }
 0x332   :  { %1089 = vmatmul.mubr.f32.vlgmr.msra.gmra.mrb[6].mxu1 %v922_v35  ;;  %v3957_v35 = vld [vmem:[%s5208_s5 + $0x2d0] ss:$8 sps:$4 sm:$0xff]  }
 0x333   :  { %3182 = vmatpush1.bf16.msra.mxu1 %v3870_v36  ;;  %1159 = vmatprep.mubr.f32.mxu1 %v752_v33  ;;  %v3954_v33 = vld [vmem:[%s5208_s5 + $0x2c0] ss:$8 sps:$4 sm:$0xff]   ;;  %v3958_v36 = vld [vmem:[%s5208_s5 + $0x2e4] ss:$8 sps:$4 sm:$0xff]  }
 0x334   :  { %3184 = vmatprep.subr.bf16.mxu1 %v3871_v38  ;;  %v3961_v38 = vld [vmem:[%s5208_s5 + $0x2f4] ss:$8 sps:$4 sm:$0xff]  }
 0x337   :  { %3186 = vmatpush1.bf16.msra.mxu1 %v3873_v40  ;;  %v3963_v40 = vld [vmem:[%s5208_s5 + $0x2f0] ss:$8 sps:$4 sm:$0xff]  }
 0x338   :  { %3188 = vmatprep.subr.bf16.mxu1 %v3874_v42  ;;  %v1412_v42 = vld [vmem:[#allocation10] sm:$0x3] }
 0x33b   :  { %3190 = vmatpush1.bf16.msra.mxu1 %v3876_v43  ;;  %v1417_v43 = vrot.slane %v1412_v42, %v4536_v39 }
 0x33c   :  { %3192 = vmatprep.subr.bf16.mxu1 %v3877_v44  ;;  %v1421_v44 = vrot.slane %v1412_v42, %v4538_v41  ;;  %v4033_v42 = vld [vmem:[#allocation13 + $0x74] ss:$8 sps:$4 sm:$0xff]  }
 0x33f   :  { %3194 = vmatpush1.bf16.msra.mxu1 %v3879_v45 }
 0x340   :  { %3196 = vmatprep.subr.bf16.mxu1 %v3880_v46 }
 0x343   :  { %3198 = vmatpush1.bf16.msra.mxu1 %v3882_v47 }
 0x344   :  { %3200 = vmatprep.subr.bf16.mxu1 %v3883_v48 }
 0x347   :  { %3202 = vmatpush1.bf16.msra.mxu1 %v3885_v49 }
 0x348   :  { %3204 = vmatprep.subr.bf16.mxu1 %v3886_v50 }
 0x34b   :  { %3206 = vmatpush1.bf16.msra.mxu1 %v3888_v51  ;;  %v1428_v51 = vld [vmem:[#allocation11] sm:$0xf] }
 0x34c   :  { %3208 = vmatprep.subr.bf16.mxu1 %v3889_v52  ;;  %v1601_v52 = vld [vmem:[#allocation11 + $0x4] sm:$0xf] }
 0x34f   :  { %3210 = vmatpush1.bf16.msra.mxu1 %v3891_v53  ;;  %v3966_v53 = vld [vmem:[#allocation13 + $0x100] ss:$8 sps:$4 sm:$0xff]  }
 0x350   :  { %3212 = vmatprep.subr.bf16.mxu1 %v3892_v54  ;;  %v3967_v54 = vld [vmem:[#allocation13 + $0x114] ss:$8 sps:$4 sm:$0xff]  }
 0x353   :  { %3214 = vmatpush1.bf16.msra.mxu1 %v3894_v55  ;;  %v3969_v55 = vld [vmem:[#allocation13 + $0x110] ss:$8 sps:$4 sm:$0xff]  }
 0x354   :  { %3216 = vmatprep.subr.bf16.mxu1 %v3895_v56  ;;  %v3970_v56 = vld [vmem:[#allocation13 + $0x124] ss:$8 sps:$4 sm:$0xff]  }
 0x357   :  { %3218 = vmatpush1.bf16.msra.mxu1 %v3897_v57  ;;  %v3972_v57 = vld [vmem:[#allocation13 + $0x120] ss:$8 sps:$4 sm:$0xff]  }
 0x358   :  { %3220 = vmatprep.subr.bf16.mxu1 %v3898_v58  ;;  %v3973_v58 = vld [vmem:[#allocation13 + $0x134] ss:$8 sps:$4 sm:$0xff]  }
 0x35b   :  { %3222 = vmatpush1.bf16.msra.mxu1 %v3900_v59  ;;  %v3975_v59 = vld [vmem:[#allocation13 + $0x130] ss:$8 sps:$4 sm:$0xff]  }
 0x35c   :  { %3224 = vmatprep.subr.bf16.mxu1 %v3901_v60  ;;  %v3976_v60 = vld [vmem:[#allocation13 + $0x144] ss:$8 sps:$4 sm:$0xff]  }
 0x35f   :  { %3226 = vmatpush1.bf16.msra.mxu1 %v3903_v61  ;;  %v3978_v61 = vld [vmem:[#allocation13 + $0x140] ss:$8 sps:$4 sm:$0xff]  }
 0x360   :  { %3228 = vmatprep.subr.bf16.mxu1 %v3904_v62  ;;  %v3979_v62 = vld [vmem:[#allocation13 + $0x154] ss:$8 sps:$4 sm:$0xff]  }
 0x363   :  { %3230 = vmatpush1.bf16.msra.mxu1 %v3906_v63  ;;  %v3981_v63 = vld [vmem:[#allocation13 + $0x150] ss:$8 sps:$4 sm:$0xff]  }
 0x364   :  { %3232 = vmatprep.subr.bf16.mxu1 %v3907_v0  ;;  %v3982_v0 = vld [vmem:[#allocation13 + $0x164] ss:$8 sps:$4 sm:$0xff]  }
 0x367   :  { %3234 = vmatpush1.bf16.msra.mxu1 %v3909_v1  ;;  %v3984_v1 = vld [vmem:[#allocation13 + $0x160] ss:$8 sps:$4 sm:$0xff]  }
 0x368   :  { %3236 = vmatprep.subr.bf16.mxu1 %v3910_v2  ;;  %v3985_v2 = vld [vmem:[#allocation13 + $0x174] ss:$8 sps:$4 sm:$0xff]  }
 0x36b   :  { %3238 = vmatpush1.bf16.msra.mxu1 %v3912_v3  ;;  %v3987_v3 = vld [vmem:[#allocation13 + $0x170] ss:$8 sps:$4 sm:$0xff]  }
 0x36c   :  { %3240 = vmatprep.subr.bf16.mxu1 %v3913_v4  ;;  %v3988_v4 = vld [vmem:[#allocation13 + $0x184] ss:$8 sps:$4 sm:$0xff]  }
 0x36f   :  { %3242 = vmatpush1.bf16.msra.mxu1 %v3915_v5  ;;  %v3990_v5 = vld [vmem:[#allocation13 + $0x180] ss:$8 sps:$4 sm:$0xff]  }
 0x370   :  { %3248 = vmatprep.subr.bf16.mxu1 %v3916_v6  ;;  %v3991_v6 = vld [vmem:[#allocation13 + $0x194] ss:$8 sps:$4 sm:$0xff]  }
 0x372   :  { %1160 = vmatmul.mubr.f32.vlgmr.msra.gmra.mrb[6].mxu1 %v4646_v31  ;;  %v3952_v31 = vld [vmem:[%s5208_s5 + $0x2c4] ss:$8 sps:$4 sm:$0xff]  }
 0x373   :  { %3250 = vmatpush1.bf16.msra.mxu1 %v3918_v7  ;;  %1403 = vmatprep.mubr.f32.mxu1 %v4650_v34  ;;  %v3955_v34 = vld [vmem:[%s5208_s5 + $0x2d4] ss:$8 sps:$4 sm:$0xff]   ;;  %v3993_v7 = vld [vmem:[#allocation13 + $0x190] ss:$8 sps:$4 sm:$0xff]  }
 0x374   :  { %3252 = vmatprep.subr.bf16.mxu1 %v3919_v8  ;;  %v3994_v8 = vld [vmem:[#allocation13 + $0x1a4] ss:$8 sps:$4 sm:$0xff]  }
 0x377   :  { %3254 = vmatpush1.bf16.msra.mxu1 %v3921_v9  ;;  %v3996_v9 = vld [vmem:[#allocation13 + $0x1a0] ss:$8 sps:$4 sm:$0xff]  }
 0x378   :  { %3256 = vmatprep.subr.bf16.mxu1 %v3922_v10  ;;  %v3997_v10 = vld [vmem:[#allocation13 + $0x1b4] ss:$8 sps:$4 sm:$0xff]  }
 0x37b   :  { %3258 = vmatpush1.bf16.msra.mxu1 %v3924_v11  ;;  %v3999_v11 = vld [vmem:[#allocation13 + $0x1b0] ss:$8 sps:$4 sm:$0xff]  }
 0x37c   :  { %3260 = vmatprep.subr.bf16.mxu1 %v3925_v12  ;;  %v4000_v12 = vld [vmem:[#allocation13 + $0x1c4] ss:$8 sps:$4 sm:$0xff]  }
 0x37f   :  { %3262 = vmatpush1.bf16.msra.mxu1 %v3927_v13  ;;  %v4002_v13 = vld [vmem:[#allocation13 + $0x1c0] ss:$8 sps:$4 sm:$0xff]  }
 0x380   :  { %3264 = vmatprep.subr.bf16.mxu1 %v3928_v14  ;;  %v4003_v14 = vld [vmem:[#allocation13 + $0x1d4] ss:$8 sps:$4 sm:$0xff]  }
 0x383   :  { %3266 = vmatpush1.bf16.msra.mxu1 %v3930_v15  ;;  %v4005_v15 = vld [vmem:[#allocation13 + $0x1d0] ss:$8 sps:$4 sm:$0xff]  }
 0x384   :  { %3268 = vmatprep.subr.bf16.mxu1 %v3931_v16  ;;  %v4006_v16 = vld [vmem:[#allocation13 + $0x1e4] ss:$8 sps:$4 sm:$0xff]  }
 0x387   :  { %3270 = vmatpush1.bf16.msra.mxu1 %v3933_v17  ;;  %v4008_v17 = vld [vmem:[#allocation13 + $0x1e0] ss:$8 sps:$4 sm:$0xff]  }
 0x388   :  { %3272 = vmatprep.subr.bf16.mxu1 %v3934_v19  ;;  %v4009_v19 = vld [vmem:[#allocation13 + $0x1f4] ss:$8 sps:$4 sm:$0xff]  }
 0x38b   :  { %3274 = vmatpush1.bf16.msra.mxu1 %v3936_v20  ;;  %v4011_v20 = vld [vmem:[#allocation13 + $0x1f0] ss:$8 sps:$4 sm:$0xff]  }
 0x38c   :  { %3276 = vmatprep.subr.bf16.mxu1 %v3937_v21  ;;  %v4012_v21 = vld [vmem:[#allocation13 + $0x4] ss:$8 sps:$4 sm:$0xff]  }
 0x38f   :  { %3278 = vmatpush1.bf16.msra.mxu1 %v3939_v22 }
 0x390   :  { %3280 = vmatprep.subr.bf16.mxu1 %v3940_v23 }
 0x393   :  { %3282 = vmatpush1.bf16.msra.mxu1 %v3942_v24 }
 0x394   :  { %3284 = vmatprep.subr.bf16.mxu1 %v3943_v25  ;;  %v4014_v25 = vld [vmem:[#allocation13] ss:$8 sps:$4 sm:$0xff]  }
 0x397   :  { %3286 = vmatpush1.bf16.msra.mxu1 %v3945_v26 }
 0x398   :  { %3288 = vmatprep.subr.bf16.mxu1 %v3946_v27  ;;  %v4015_v27 = vld [vmem:[#allocation13 + $0x14] ss:$8 sps:$4 sm:$0xff]  }
 0x39b   :  { %3290 = vmatpush1.bf16.msra.mxu1 %v3948_v28  ;;  %v4017_v28 = vld [vmem:[#allocation13 + $0x10] ss:$8 sps:$4 sm:$0xff]  }
 0x39c   :  { %3292 = vmatprep.subr.bf16.mxu1 %v3949_v29  ;;  %v4018_v29 = vld [vmem:[#allocation13 + $0x24] ss:$8 sps:$4 sm:$0xff]  }
 0x39f   :  { %3294 = vmatpush1.bf16.msra.mxu1 %v3951_v30  ;;  %v4020_v30 = vld [vmem:[#allocation13 + $0x20] ss:$8 sps:$4 sm:$0xff]  }
 0x3a0   :  { %3296 = vmatprep.subr.bf16.mxu1 %v3952_v31  ;;  %v4021_v31 = vld [vmem:[#allocation13 + $0x34] ss:$8 sps:$4 sm:$0xff]  }
 0x3a3   :  { %3298 = vmatpush1.bf16.msra.mxu1 %v3954_v33  ;;  %v4023_v33 = vld [vmem:[#allocation13 + $0x30] ss:$8 sps:$4 sm:$0xff]  }
 0x3a4   :  { %3300 = vmatprep.subr.bf16.mxu1 %v3955_v34  ;;  %v4024_v34 = vld [vmem:[#allocation13 + $0x44] ss:$8 sps:$4 sm:$0xff]  }
 0x3a7   :  { %3302 = vmatpush1.bf16.msra.mxu1 %v3957_v35  ;;  %v4026_v35 = vld [vmem:[#allocation13 + $0x40] ss:$8 sps:$4 sm:$0xff]  }
 0x3a8   :  { %3304 = vmatprep.subr.bf16.mxu1 %v3958_v36  ;;  %v4027_v36 = vld [vmem:[#allocation13 + $0x54] ss:$8 sps:$4 sm:$0xff]  }
 0x3ab   :  { %3306 = vmatpush1.bf16.msra.mxu1 %v3960_v37  ;;  %v4029_v37 = vld [vmem:[#allocation13 + $0x50] ss:$8 sps:$4 sm:$0xff]  }
 0x3ac   :  { %3308 = vmatprep.subr.bf16.mxu1 %v3961_v38  ;;  %v4030_v38 = vld [vmem:[#allocation13 + $0x64] ss:$8 sps:$4 sm:$0xff]  }
 0x3af   :  { %3310 = vmatpush1.bf16.msra.mxu1 %v3963_v40  ;;  %v4032_v40 = vld [vmem:[#allocation13 + $0x60] ss:$8 sps:$4 sm:$0xff]  }
 0x3b2   :  { %1404 = vmatmul.mubr.f32.vlgmr.msra.gmra.mrb[6].mxu1 %v4648_v32  ;;  %v3964_v32 = vld [vmem:[#allocation13 + $0x104] ss:$8 sps:$4 sm:$0xff]  }
 0x3b3   :  { %2253 = vmatprep.mubr.f32.mxu1 %v4305_v18 }
 0x485   :  { %v1405_v45 = vpop.f32.mrb[6].mxu1 }
 0x486   :  { %v1424_v46 = vadd.f32 %v1417_v43, %v1405_v45  ;;  %v1407_v47 = vpop.f32.mrb[7].mxu1  ;;  %v4035_v43 = vld [vmem:[#allocation13 + $0x70] ss:$8 sps:$4 sm:$0xff]   ;;  %v4038_v45 = vld [vmem:[#allocation13 + $0x80] ss:$8 sps:$4 sm:$0xff]  }
 0x487   :  { %v1425_v48 = vadd.f32 %v1421_v44, %v1407_v47  ;;  %v4036_v44 = vld [vmem:[#allocation13 + $0x84] ss:$8 sps:$4 sm:$0xff]   ;;  %v4041_v47 = vld [vmem:[#allocation13 + $0x90] ss:$8 sps:$4 sm:$0xff]  }
 0x488   :  { %v4849_v50 = vmax.f32 %v1424_v46, 0.0  ;;  %v4039_v46 = vld [vmem:[#allocation13 + $0x94] ss:$8 sps:$4 sm:$0xff]  }
 0x489   :  { %v4847_v49 = vmax.f32 %v1425_v48, 0.0  ;;  %v4042_v48 = vld [vmem:[#allocation13 + $0xa4] ss:$8 sps:$4 sm:$0xff]  }
 0x48b   :  { %1433 = vmatprep.subr.mxu0 %v4847_v49 }
 0x48c   :  { %1434 = vmatpush1.msra.mxu0 %v4849_v50 }
 0x48d   :  { %2836 = vmatmul.mubr.msk.f32.vlgmr.msra.gmra.mrb[10].mxu0 %vm1429_vm2, %v1428_v51  ;;  %1605 = vmatprep.subr.mxu0 %v4847_v49  ;;  %v4044_v51 = vld [vmem:[#allocation13 + $0xa0] ss:$8 sps:$4 sm:$0xff]  }
 0x48e   :  { %1606 = vmatpush1.msra.mxu0 %v4849_v50  ;;  %1669 = vmatprep.mubr.f32.mxu0 %v4305_v18 }
 0x48f   :  { %3312 = vmatprep.subr.bf16.mxu0 %v3964_v32  ;;  %v4045_v32 = vld [vmem:[#allocation13 + $0xb4] ss:$8 sps:$4 sm:$0xff]  }
 0x491   :  { %2837 = vmatmul.mubr.msk.f32.vlgmr.msra.gmra.mrb[12].mxu0 %vm1429_vm2, %v1601_v52  ;;  %v4047_v52 = vld [vmem:[#allocation13 + $0xb0] ss:$8 sps:$4 sm:$0xff]  }
 0x492   :  { %3314 = vmatpush1.bf16.msra.mxu0 %v3966_v53  ;;  %v4048_v53 = vld [vmem:[#allocation13 + $0xc4] ss:$8 sps:$4 sm:$0xff]  }
 0x493   :  { %3316 = vmatprep.subr.bf16.mxu0 %v3967_v54  ;;  %v4050_v54 = vld [vmem:[#allocation13 + $0xc0] ss:$8 sps:$4 sm:$0xff]  }
 0x496   :  { %3318 = vmatpush1.bf16.msra.mxu0 %v3969_v55  ;;  %v4051_v55 = vld [vmem:[#allocation13 + $0xd4] ss:$8 sps:$4 sm:$0xff]  }
 0x497   :  { %3320 = vmatprep.subr.bf16.mxu0 %v3970_v56  ;;  %v4053_v56 = vld [vmem:[#allocation13 + $0xd0] ss:$8 sps:$4 sm:$0xff]  }
 0x49a   :  { %3322 = vmatpush1.bf16.msra.mxu0 %v3972_v57  ;;  %v4054_v57 = vld [vmem:[#allocation13 + $0xe4] ss:$8 sps:$4 sm:$0xff]  }
 0x49b   :  { %3324 = vmatprep.subr.bf16.mxu0 %v3973_v58  ;;  %v4056_v58 = vld [vmem:[#allocation13 + $0xe0] ss:$8 sps:$4 sm:$0xff]  }
 0x49e   :  { %3326 = vmatpush1.bf16.msra.mxu0 %v3975_v59  ;;  %v4057_v59 = vld [vmem:[#allocation13 + $0xf4] ss:$8 sps:$4 sm:$0xff]  }
 0x49f   :  { %3328 = vmatprep.subr.bf16.mxu0 %v3976_v60  ;;  %v4059_v60 = vld [vmem:[#allocation13 + $0xf0] ss:$8 sps:$4 sm:$0xff]  }
 0x4a2   :  { %3330 = vmatpush1.bf16.msra.mxu0 %v3978_v61  ;;  %v4060_v61 = vld [vmem:[#allocation13 + $0x204] ss:$8 sps:$4 sm:$0xff]  }
 0x4a3   :  { %3332 = vmatprep.subr.bf16.mxu0 %v3979_v62  ;;  %v1916_v62 = vld [vmem:[#allocation11 + $0x8] sm:$0xf] }
 0x4a6   :  { %3334 = vmatpush1.bf16.msra.mxu0 %v3981_v63  ;;  %v4062_v63 = vld [vmem:[#allocation13 + $0x200] ss:$8 sps:$4 sm:$0xff]  }
 0x4a7   :  { %3336 = vmatprep.subr.bf16.mxu0 %v3982_v0  ;;  %v4063_v0 = vld [vmem:[#allocation13 + $0x214] ss:$8 sps:$4 sm:$0xff]  }
 0x4aa   :  { %3338 = vmatpush1.bf16.msra.mxu0 %v3984_v1  ;;  %v4065_v1 = vld [vmem:[#allocation13 + $0x210] ss:$8 sps:$4 sm:$0xff]  }
 0x4ab   :  { %3340 = vmatprep.subr.bf16.mxu0 %v3985_v2  ;;  %v4066_v2 = vld [vmem:[#allocation13 + $0x224] ss:$8 sps:$4 sm:$0xff]  }
 0x4ae   :  { %3342 = vmatpush1.bf16.msra.mxu0 %v3987_v3  ;;  %v4068_v3 = vld [vmem:[#allocation13 + $0x220] ss:$8 sps:$4 sm:$0xff]  }
 0x4af   :  { %3344 = vmatprep.subr.bf16.mxu0 %v3988_v4  ;;  %v4071_v4 = vld [vmem:[#allocation13 + $0x230] ss:$8 sps:$4 sm:$0xff]  }
 0x4b2   :  { %3346 = vmatpush1.bf16.msra.mxu0 %v3990_v5  ;;  %v4074_v5 = vld [vmem:[#allocation13 + $0x240] ss:$8 sps:$4 sm:$0xff]  }
 0x4b3   :  { %3348 = vmatprep.subr.bf16.mxu0 %v3991_v6  ;;  %v4075_v6 = vld [vmem:[#allocation13 + $0x254] ss:$8 sps:$4 sm:$0xff]  }
 0x4b6   :  { %3350 = vmatpush1.bf16.msra.mxu0 %v3993_v7  ;;  %v4077_v7 = vld [vmem:[#allocation13 + $0x250] ss:$8 sps:$4 sm:$0xff]  }
 0x4b7   :  { %3352 = vmatprep.subr.bf16.mxu0 %v3994_v8  ;;  %v4078_v8 = vld [vmem:[#allocation13 + $0x264] ss:$8 sps:$4 sm:$0xff]  }
 0x4ba   :  { %3354 = vmatpush1.bf16.msra.mxu0 %v3996_v9  ;;  %v4080_v9 = vld [vmem:[#allocation13 + $0x260] ss:$8 sps:$4 sm:$0xff]  }
 0x4bb   :  { %3356 = vmatprep.subr.bf16.mxu0 %v3997_v10  ;;  %v4081_v10 = vld [vmem:[#allocation13 + $0x274] ss:$8 sps:$4 sm:$0xff]  }
 0x4be   :  { %3358 = vmatpush1.bf16.msra.mxu0 %v3999_v11  ;;  %v4083_v11 = vld [vmem:[#allocation13 + $0x270] ss:$8 sps:$4 sm:$0xff]  }
 0x4bf   :  { %3360 = vmatprep.subr.bf16.mxu0 %v4000_v12  ;;  %v4084_v12 = vld [vmem:[#allocation13 + $0x284] ss:$8 sps:$4 sm:$0xff]  }
 0x4c2   :  { %3362 = vmatpush1.bf16.msra.mxu0 %v4002_v13  ;;  %v4086_v13 = vld [vmem:[#allocation13 + $0x280] ss:$8 sps:$4 sm:$0xff]  }
 0x4c3   :  { %3364 = vmatprep.subr.bf16.mxu0 %v4003_v14  ;;  %v4087_v14 = vld [vmem:[#allocation13 + $0x294] ss:$8 sps:$4 sm:$0xff]  }
 0x4c6   :  { %3366 = vmatpush1.bf16.msra.mxu0 %v4005_v15  ;;  %v4089_v15 = vld [vmem:[#allocation13 + $0x290] ss:$8 sps:$4 sm:$0xff]  }
 0x4c7   :  { %3368 = vmatprep.subr.bf16.mxu0 %v4006_v16  ;;  %v4090_v16 = vld [vmem:[#allocation13 + $0x2a4] ss:$8 sps:$4 sm:$0xff]  }
 0x4ca   :  { %3370 = vmatpush1.bf16.msra.mxu0 %v4008_v17  ;;  %v4092_v17 = vld [vmem:[#allocation13 + $0x2a0] ss:$8 sps:$4 sm:$0xff]  }
 0x4cb   :  { %3372 = vmatprep.subr.bf16.mxu0 %v4009_v19  ;;  %v4093_v19 = vld [vmem:[#allocation13 + $0x2b4] ss:$8 sps:$4 sm:$0xff]  }
 0x4ce   :  { %3374 = vmatpush1.bf16.msra.mxu0 %v4011_v20  ;;  %v4095_v20 = vld [vmem:[#allocation13 + $0x2b0] ss:$8 sps:$4 sm:$0xff]  }
 0x4cf   :  { %3376 = vmatprep.subr.bf16.mxu0 %v4012_v21  ;;  %v4096_v21 = vld [vmem:[#allocation13 + $0x2c4] ss:$8 sps:$4 sm:$0xff]  }
 0x560   :  { %v4858_v22 = vpop.f32.mrb[10].mxu0 }
 0x561   :  { %v1501_v23 = vpop.f32.mrb[11].mxu0 }
 0x564   :  { %v1671_v24 = vpop.f32.mrb[12].mxu0 }
 0x565   :  { %v1673_v26 = vpop.f32.mrb[13].mxu0 }
 0x566   :  { %1837 = vmatprep.mubr.f32.mxu0 %v1673_v26  ;;  %v4104_v26 = vld [vmem:[#allocation13 + $0x2e0] ss:$8 sps:$4 sm:$0xff]  }
 0x567   :  { %1838 = vmatmul.mubr.f32.vlgmr.msra.gmra.mrb[14].mxu0 %v1671_v24  ;;  %v4101_v24 = vld [vmem:[#allocation13 + $0x2d0] ss:$8 sps:$4 sm:$0xff]  }
 0x568   :  { %3378 = vmatpush1.bf16.msra.mxu0 %v4014_v25  ;;  %1908 = vmatprep.mubr.f32.mxu0 %v1501_v23  ;;  %v4099_v23 = vld [vmem:[#allocation13 + $0x2d4] ss:$8 sps:$4 sm:$0xff]   ;;  %v4102_v25 = vld [vmem:[#allocation13 + $0x2e4] ss:$8 sps:$4 sm:$0xff]  }
 0x569   :  { %3380 = vmatprep.subr.bf16.mxu0 %v4015_v27  ;;  %v4105_v27 = vld [vmem:[#allocation13 + $0x2f4] ss:$8 sps:$4 sm:$0xff]  }
 0x56c   :  { %3382 = vmatpush1.bf16.msra.mxu0 %v4017_v28  ;;  %v4107_v28 = vld [vmem:[#allocation13 + $0x2f0] ss:$8 sps:$4 sm:$0xff]  }
 0x56d   :  { %3384 = vmatprep.subr.bf16.mxu0 %v4018_v29 }
 0x570   :  { %3386 = vmatpush1.bf16.msra.mxu0 %v4020_v30 }
 0x571   :  { %3388 = vmatprep.subr.bf16.mxu0 %v4021_v31  ;;  %v2276_v31 = vld [vmem:[%s5214_s11 + $0x80] sm:$0xff] }
 0x574   :  { %3390 = vmatpush1.bf16.msra.mxu0 %v4023_v33  ;;  %v2277_v33 = vld [vmem:[%s5214_s11 + $0x88] sm:$0xff] }
 0x575   :  { %3392 = vmatprep.subr.bf16.mxu0 %v4024_v34  ;;  %v2260_v34 = vld [vmem:[%s5214_s11] sm:$0xff] }
 0x578   :  { %3394 = vmatpush1.bf16.msra.mxu0 %v4026_v35  ;;  %v3535_v35 = vpack.c.bf16 %v2277_v33, %v2276_v31 }
 0x579   :  { %3396 = vmatprep.subr.bf16.mxu0 %v4027_v36  ;;  %v2261_v36 = vld [vmem:[%s5214_s11 + $0x8] sm:$0xff] }
 0x57c   :  { %3398 = vmatpush1.bf16.msra.mxu0 %v4029_v37  ;;  %v2278_v37 = vld [vmem:[%s5214_s11 + $0x90] sm:$0xff] }
 0x57d   :  { %3400 = vmatprep.subr.bf16.mxu0 %v4030_v38  ;;  %v2279_v38 = vld [vmem:[%s5214_s11 + $0x98] sm:$0xff] }
 0x580   :  { %3402 = vmatpush1.bf16.msra.mxu0 %v4032_v40  ;;  %v3537_v40 = vpack.c.bf16 %v2261_v36, %v2260_v34  ;;  %v2848_v34 = vld [vmem:[%s5214_s11 + $0x110] sm:$0xff]  ;;  %v2866_v36 = vld [vmem:[%s5214_s11 + $0x1a0] sm:$0xff] }
 0x581   :  { %3404 = vmatprep.subr.bf16.mxu0 %v4033_v42  ;;  %v3539_v42 = vpack.c.bf16 %v2279_v38, %v2278_v37  ;;  %v2867_v37 = vld [vmem:[%s5214_s11 + $0x1a8] sm:$0xff] }
 0x584   :  { %3406 = vmatpush1.bf16.msra.mxu0 %v4035_v43  ;;  %v2262_v43 = vld [vmem:[%s5214_s11 + $0x10] sm:$0xff] }
 0x585   :  { %3408 = vmatprep.subr.bf16.mxu0 %v4036_v44  ;;  %v2263_v44 = vld [vmem:[%s5214_s11 + $0x18] sm:$0xff] }
 0x588   :  { %3410 = vmatpush1.bf16.msra.mxu0 %v4038_v45  ;;  %v2280_v45 = vld [vmem:[%s5214_s11 + $0xa0] sm:$0xff] }
 0x589   :  { %3412 = vmatprep.subr.bf16.mxu0 %v4039_v46  ;;  %v2281_v46 = vld [vmem:[%s5214_s11 + $0xa8] sm:$0xff] }
 0x58c   :  { %3414 = vmatpush1.bf16.msra.mxu0 %v4041_v47  ;;  %v3541_v47 = vpack.c.bf16 %v2263_v44, %v2262_v43  ;;  %v2851_v43 = vld [vmem:[%s5214_s11 + $0x128] sm:$0xff]  ;;  %v2868_v44 = vld [vmem:[%s5214_s11 + $0x1b0] sm:$0xff] }
 0x58d   :  { %3416 = vmatprep.subr.bf16.mxu0 %v4042_v48  ;;  %v3543_v48 = vpack.c.bf16 %v2281_v46, %v2280_v45  ;;  %v2869_v45 = vld [vmem:[%s5214_s11 + $0x1b8] sm:$0xff] }
 0x590   :  { %3418 = vmatpush1.bf16.msra.mxu0 %v4044_v51  ;;  %v2264_v51 = vld [vmem:[%s5214_s11 + $0x20] sm:$0xff] }
 0x591   :  { %3420 = vmatprep.subr.bf16.mxu0 %v4045_v32  ;;  %v2265_v32 = vld [vmem:[%s5214_s11 + $0x28] sm:$0xff] }
 0x594   :  { %3422 = vmatpush1.bf16.msra.mxu0 %v4047_v52  ;;  %v2282_v52 = vld [vmem:[%s5214_s11 + $0xb0] sm:$0xff] }
 0x595   :  { %3424 = vmatprep.subr.bf16.mxu0 %v4048_v53  ;;  %v2283_v53 = vld [vmem:[%s5214_s11 + $0xb8] sm:$0xff] }
 0x598   :  { %3426 = vmatpush1.bf16.msra.mxu0 %v4050_v54  ;;  %v3545_v54 = vpack.c.bf16 %v2265_v32, %v2264_v51  ;;  %v2853_v51 = vld [vmem:[%s5214_s11 + $0x138] sm:$0xff]  ;;  %v2870_v32 = vld [vmem:[%s5214_s11 + $0x1c0] sm:$0xff] }
 0x599   :  { %3428 = vmatprep.subr.bf16.mxu0 %v4051_v55  ;;  %v3547_v55 = vpack.c.bf16 %v2283_v53, %v2282_v52  ;;  %v2871_v52 = vld [vmem:[%s5214_s11 + $0x1c8] sm:$0xff] }
 0x59c   :  { %3430 = vmatpush1.bf16.msra.mxu0 %v4053_v56  ;;  %v2266_v56 = vld [vmem:[%s5214_s11 + $0x30] sm:$0xff] }
 0x59d   :  { %3432 = vmatprep.subr.bf16.mxu0 %v4054_v57  ;;  %v2267_v57 = vld [vmem:[%s5214_s11 + $0x38] sm:$0xff] }
 0x5a0   :  { %3434 = vmatpush1.bf16.msra.mxu0 %v4056_v58  ;;  %v2284_v58 = vld [vmem:[%s5214_s11 + $0xc0] sm:$0xff] }
 0x5a1   :  { %3436 = vmatprep.subr.bf16.mxu0 %v4057_v59  ;;  %v2285_v59 = vld [vmem:[%s5214_s11 + $0xc8] sm:$0xff] }
 0x5a4   :  { %3438 = vmatpush1.bf16.msra.mxu0 %v4059_v60  ;;  %v3549_v60 = vpack.c.bf16 %v2267_v57, %v2266_v56  ;;  %v2855_v56 = vld [vmem:[%s5214_s11 + $0x148] sm:$0xff]  ;;  %v2872_v57 = vld [vmem:[%s5214_s11 + $0x1d0] sm:$0xff] }
 0x5a5   :  { %1920 = vmatprep.subr.mxu0 %v4847_v49  ;;  %v4069_v49 = vld [vmem:[#allocation13 + $0x234] ss:$8 sps:$4 sm:$0xff]  }
 0x5a7   :  { %1909 = vmatmul.mubr.f32.vlgmr.msra.gmra.mrb[14].mxu0 %v4858_v22  ;;  %v4098_v22 = vld [vmem:[#allocation13 + $0x2c0] ss:$8 sps:$4 sm:$0xff]  }
 0x5a8   :  { %1921 = vmatpush1.msra.mxu0 %v4849_v50  ;;  %1984 = vmatprep.mubr.f32.mxu0 %v4305_v18  ;;  %v4072_v50 = vld [vmem:[#allocation13 + $0x244] ss:$8 sps:$4 sm:$0xff]  }
 0x5a9   :  { %3440 = vmatprep.subr.bf16.mxu0 %v4060_v61  ;;  %v3551_v61 = vpack.c.bf16 %v2285_v59, %v2284_v58  ;;  %v2873_v58 = vld [vmem:[%s5214_s11 + $0x1d8] sm:$0xff] }
 0x5ab   :  { %2838 = vmatmul.mubr.msk.f32.vlgmr.msra.gmra.mrb[16].mxu0 %vm1429_vm2, %v1916_v62  ;;  %v2268_v62 = vld [vmem:[%s5214_s11 + $0x40] sm:$0xff] }
 0x5ac   :  { %3442 = vmatpush1.bf16.msra.mxu0 %v4062_v63  ;;  %v2269_v63 = vld [vmem:[%s5214_s11 + $0x48] sm:$0xff] }
 0x5ad   :  { %3444 = vmatprep.subr.bf16.mxu0 %v4063_v0  ;;  %v2286_v0 = vld [vmem:[%s5214_s11 + $0xd0] sm:$0xff] }
 0x5b0   :  { %3446 = vmatpush1.bf16.msra.mxu0 %v4065_v1  ;;  %v2287_v1 = vld [vmem:[%s5214_s11 + $0xd8] sm:$0xff] }
 0x5b1   :  { %3448 = vmatprep.subr.bf16.mxu0 %v4066_v2  ;;  %v3553_v2 = vpack.c.bf16 %v2269_v63, %v2268_v62  ;;  %v2857_v62 = vld [vmem:[%s5214_s11 + $0x158] sm:$0xff]  ;;  %v2874_v63 = vld [vmem:[%s5214_s11 + $0x1e0] sm:$0xff] }
 0x5b4   :  { %3450 = vmatpush1.bf16.msra.mxu0 %v4068_v3  ;;  %v3555_v3 = vpack.c.bf16 %v2287_v1, %v2286_v0  ;;  %v2875_v0 = vld [vmem:[%s5214_s11 + $0x1e8] sm:$0xff] }
 0x5b5   :  { %3452 = vmatprep.subr.bf16.mxu0 %v4069_v49  ;;  %v2270_v49 = vld [vmem:[%s5214_s11 + $0x50] sm:$0xff] }
 0x5b8   :  { %3454 = vmatpush1.bf16.msra.mxu0 %v4071_v4  ;;  %v2271_v4 = vld [vmem:[%s5214_s11 + $0x58] sm:$0xff] }
 0x5b9   :  { %3456 = vmatprep.subr.bf16.mxu0 %v4072_v50  ;;  %v2288_v50 = vld [vmem:[%s5214_s11 + $0xe0] sm:$0xff] }
 0x5bc   :  { %3458 = vmatpush1.bf16.msra.mxu0 %v4074_v5  ;;  %v2289_v5 = vld [vmem:[%s5214_s11 + $0xe8] sm:$0xff] }
 0x5bd   :  { %3460 = vmatprep.subr.bf16.mxu0 %v4075_v6  ;;  %v3557_v6 = vpack.c.bf16 %v2271_v4, %v2270_v49  ;;  %v2859_v49 = vld [vmem:[%s5214_s11 + $0x168] sm:$0xff]  ;;  %v2876_v4 = vld [vmem:[%s5214_s11 + $0x1f0] sm:$0xff] }
 0x5c0   :  { %3462 = vmatpush1.bf16.msra.mxu0 %v4077_v7  ;;  %v3559_v7 = vpack.c.bf16 %v2289_v5, %v2288_v50  ;;  %v2877_v50 = vld [vmem:[%s5214_s11 + $0x1f8] sm:$0xff] }
 0x5c1   :  { %3464 = vmatprep.subr.bf16.mxu0 %v4078_v8  ;;  %v2272_v8 = vld [vmem:[%s5214_s11 + $0x60] sm:$0xff] }
 0x5c4   :  { %3466 = vmatpush1.bf16.msra.mxu0 %v4080_v9  ;;  %v2273_v9 = vld [vmem:[%s5214_s11 + $0x68] sm:$0xff] }
 0x5c5   :  { %3468 = vmatprep.subr.bf16.mxu0 %v4081_v10  ;;  %v2290_v10 = vld [vmem:[%s5214_s11 + $0xf0] sm:$0xff] }
 0x5c8   :  { %3470 = vmatpush1.bf16.msra.mxu0 %v4083_v11  ;;  %v2291_v11 = vld [vmem:[%s5214_s11 + $0xf8] sm:$0xff] }
 0x5c9   :  { %3472 = vmatprep.subr.bf16.mxu0 %v4084_v12  ;;  %v3561_v12 = vpack.c.bf16 %v2273_v9, %v2272_v8  ;;  %v2861_v8 = vld [vmem:[%s5214_s11 + $0x178] sm:$0xff] }
 0x5cc   :  { %3474 = vmatpush1.bf16.msra.mxu0 %v4086_v13  ;;  %v3563_v13 = vpack.c.bf16 %v2291_v11, %v2290_v10  ;;  %v2274_v10 = vld [vmem:[%s5214_s11 + $0x70] sm:$0xff]  ;;  %v2275_v11 = vld [vmem:[%s5214_s11 + $0x78] sm:$0xff] }
 0x5cd   :  { %3476 = vmatprep.subr.bf16.mxu0 %v4087_v14  ;;  %v2161_v14 = vld [vmem:[%s5212_s9] sm:$0x3] }
 0x5d0   :  { %3478 = vmatpush1.bf16.msra.mxu0 %v4089_v15  ;;  %v2166_v15 = vrot.slane %v2161_v14, %v4536_v39  ;;  %v2177_v39 = vld [vmem:[%s5213_s10] sm:$0x3] }
 0x5d1   :  { %3480 = vmatprep.subr.bf16.mxu0 %v4090_v16  ;;  %v2170_v16 = vrot.slane %v2161_v14, %v4538_v41 }
 0x5d4   :  { %3482 = vmatpush1.bf16.msra.mxu0 %v4092_v17 }
 0x5d5   :  { %3484 = vmatprep.subr.bf16.mxu0 %v4093_v19 }
 0x5d8   :  { %3486 = vmatpush1.bf16.msra.mxu0 %v4095_v20 }
 0x5d9   :  { %3488 = vmatprep.subr.bf16.mxu0 %v4096_v21 }
 0x5dc   :  { %3490 = vmatpush1.bf16.msra.mxu0 %v4098_v22  ;;  %v2862_v22 = vld [vmem:[%s5214_s11 + $0x180] sm:$0xff] }
 0x5dd   :  { %3492 = vmatprep.subr.bf16.mxu0 %v4099_v23  ;;  %v2863_v23 = vld [vmem:[%s5214_s11 + $0x188] sm:$0xff] }
 0x5de   :  { %v3503_v41 = vpack.c.bf16 %v2863_v23, %v2862_v22  ;;  %v2883_v22 = vld [vmem:[%s5214_s11 + $0x208] sm:$0xff]  ;;  %v2900_v23 = vld [vmem:[%s5214_s11 + $0x290] sm:$0xff] }
 0x5e0   :  { %3494 = vmatpush1.bf16.msra.mxu0 %v4101_v24 }
 0x5e1   :  { %3496 = vmatprep.subr.bf16.mxu0 %v4102_v25 }
 0x5e4   :  { %3498 = vmatpush1.bf16.msra.mxu0 %v4104_v26  ;;  %v2846_v26 = vld [vmem:[%s5214_s11 + $0x100] sm:$0xff] }
 0x5e5   :  { %3500 = vmatprep.subr.bf16.mxu0 %v4105_v27  ;;  %v2847_v27 = vld [vmem:[%s5214_s11 + $0x108] sm:$0xff] }
 0x5e6   :  { %v3505_v31 = vpack.c.bf16 %v2847_v27, %v2846_v26  ;;  %v2884_v27 = vld [vmem:[%s5214_s11 + $0x210] sm:$0xff] }
 0x5e8   :  { %3502 = vmatpush1.bf16.msra.mxu0 %v4107_v28  ;;  %v2864_v28 = vld [vmem:[%s5214_s11 + $0x190] sm:$0xff] }
 0x5e9   :  { %3536 = vmatprep.subr.bf16.mxu0 %v3535_v35  ;;  %v2849_v35 = vld [vmem:[%s5214_s11 + $0x118] sm:$0xff] }
 0x5ea   :  { %v3509_v38 = vpack.c.bf16 %v2849_v35, %v2848_v34  ;;  %v2904_v34 = vld [vmem:[%s5214_s11 + $0x2b0] sm:$0xff]  ;;  %v2905_v35 = vld [vmem:[%s5214_s11 + $0x2b8] sm:$0xff] }
 0x67e   :  { %v1986_v29 = vpop.f32.mrb[16].mxu0 }
 0x67f   :  { %v1988_v30 = vpop.f32.mrb[17].mxu0 }
 0x680   :  { %2152 = vmatprep.mubr.f32.mxu0 %v1988_v30  ;;  %v2842_v30 = vld [vmem:[%s5213_s10 + $0x2] sm:$0x3] }
 0x681   :  { %2153 = vmatmul.mubr.f32.vlgmr.msra.gmra.mrb[14].mxu0 %v1986_v29  ;;  %v2865_v29 = vld [vmem:[%s5214_s11 + $0x198] sm:$0xff] }
 0x682   :  { %3538 = vmatpush3.bf16.msra.mxu0 %v3537_v40  ;;  %v3507_v33 = vpack.c.bf16 %v2865_v29, %v2864_v28  ;;  %v3511_v40 = vpack.c.bf16 %v2867_v37, %v2866_v36  ;;  %v2885_v28 = vld [vmem:[%s5214_s11 + $0x218] sm:$0xff]  ;;  %v3579_v37 = vpack.c.bf16 %v2905_v35, %v2904_v34 }
 0x683   :  { %3540 = vmatprep.subr.bf16.mxu0 %v3539_v42  ;;  %v2850_v42 = vld [vmem:[%s5214_s11 + $0x120] sm:$0xff]  ;;  %v3573_v29 = vpack.c.bf16 %v2885_v28, %v2884_v27 }
 0x684   :  { %v3513_v46 = vpack.c.bf16 %v2851_v43, %v2850_v42  ;;  %v2906_v42 = vld [vmem:[%s5214_s11 + $0x2c0] sm:$0xff]  ;;  %v2907_v43 = vld [vmem:[%s5214_s11 + $0x2c8] sm:$0xff] }
 0x686   :  { %3542 = vmatpush3.bf16.msra.mxu0 %v3541_v47  ;;  %v3515_v47 = vpack.c.bf16 %v2869_v45, %v2868_v44  ;;  %v3583_v45 = vpack.c.bf16 %v2907_v43, %v2906_v42 }
 0x687   :  { %3544 = vmatprep.subr.bf16.mxu0 %v3543_v48  ;;  %v2852_v48 = vld [vmem:[%s5214_s11 + $0x130] sm:$0xff] }
 0x688   :  { %v3517_v53 = vpack.c.bf16 %v2853_v51, %v2852_v48  ;;  %v2908_v48 = vld [vmem:[%s5214_s11 + $0x2d0] sm:$0xff]  ;;  %v2909_v51 = vld [vmem:[%s5214_s11 + $0x2d8] sm:$0xff] }
 0x68a   :  { %3546 = vmatpush3.bf16.msra.mxu0 %v3545_v54  ;;  %v3519_v54 = vpack.c.bf16 %v2871_v52, %v2870_v32  ;;  %v3587_v52 = vpack.c.bf16 %v2909_v51, %v2908_v48 }
 0x68b   :  { %3548 = vmatprep.subr.bf16.mxu0 %v3547_v55  ;;  %v2854_v55 = vld [vmem:[%s5214_s11 + $0x140] sm:$0xff] }
 0x68c   :  { %v3521_v59 = vpack.c.bf16 %v2855_v56, %v2854_v55  ;;  %v2910_v56 = vld [vmem:[%s5214_s11 + $0x2e0] sm:$0xff] }
 0x68e   :  { %3550 = vmatpush3.bf16.msra.mxu0 %v3549_v60  ;;  %v3523_v60 = vpack.c.bf16 %v2873_v58, %v2872_v57  ;;  %v2911_v57 = vld [vmem:[%s5214_s11 + $0x2e8] sm:$0xff] }
 0x68f   :  { %3552 = vmatprep.subr.bf16.mxu0 %v3551_v61  ;;  %v2856_v61 = vld [vmem:[%s5214_s11 + $0x150] sm:$0xff]  ;;  %v3591_v58 = vpack.c.bf16 %v2911_v57, %v2910_v56 }
 0x690   :  { %v3525_v1 = vpack.c.bf16 %v2857_v62, %v2856_v61  ;;  %v2912_v62 = vld [vmem:[%s5214_s11 + $0x2f0] sm:$0xff] }
 0x692   :  { %3554 = vmatpush3.bf16.msra.mxu0 %v3553_v2  ;;  %v3527_v2 = vpack.c.bf16 %v2875_v0, %v2874_v63  ;;  %v2913_v63 = vld [vmem:[%s5214_s11 + $0x2f8] sm:$0xff] }
 0x693   :  { %3556 = vmatprep.subr.bf16.mxu0 %v3555_v3  ;;  %v2858_v3 = vld [vmem:[%s5214_s11 + $0x160] sm:$0xff]  ;;  %v3595_v0 = vpack.c.bf16 %v2913_v63, %v2912_v62 }
 0x694   :  { %v3529_v5 = vpack.c.bf16 %v2859_v49, %v2858_v3 }
 0x696   :  { %3558 = vmatpush3.bf16.msra.mxu0 %v3557_v6  ;;  %v3531_v6 = vpack.c.bf16 %v2877_v50, %v2876_v4 }
 0x697   :  { %3560 = vmatprep.subr.bf16.mxu0 %v3559_v7  ;;  %v2860_v7 = vld [vmem:[%s5214_s11 + $0x170] sm:$0xff] }
 0x698   :  { %v3533_v9 = vpack.c.bf16 %v2861_v8, %v2860_v7 }
 0x69a   :  { %3562 = vmatpush3.bf16.msra.mxu0 %v3561_v12  ;;  %v3565_v12 = vpack.c.bf16 %v2275_v11, %v2274_v10 }
 0x69b   :  { %3564 = vmatprep.subr.bf16.mxu0 %v3563_v13 }
 0x69e   :  { %3566 = vmatpush3.bf16.msra.mxu0 %v3565_v12 }
 0x754   :  { %v2154_v17 = vpop.f32.mrb[14].mxu0 }
 0x755   :  { %v2173_v19 = vadd.f32 %v2166_v15, %v2154_v17  ;;  %v2156_v20 = vpop.f32.mrb[15].mxu0  ;;  %v2898_v15 = vld [vmem:[%s5214_s11 + $0x280] sm:$0xff] }
 0x756   :  { %v2174_v21 = vadd.f32 %v2170_v16, %v2156_v20  ;;  %v2899_v16 = vld [vmem:[%s5214_s11 + $0x288] sm:$0xff] }
 0x757   :  { %v4968_v25 = vmax.f32 %v2173_v19, 0.0  ;;  %v3567_v20 = vpack.c.bf16 %v2899_v16, %v2898_v15 }
 0x758   :  { %v4966_v24 = vmax.f32 %v2174_v21, 0.0  ;;  %v2882_v21 = vld [vmem:[%s5214_s11 + $0x200] sm:$0xff] }
 0x75a   :  { %2839 = vmatprep.subr.msk.mxu1 %vm2182_vm3, %v4966_v24 }
 0x75b   :  { %2840 = vmatpush1.msk.msra.mxu1 %vm2182_vm3, %v4968_v25 }
 0x75c   :  { %2841 = vmatmul.mubr.msk.f32.vlgmr.msra.gmra.mrb[8].mxu1 %vm2178_vm4, %v2177_v39  ;;  %2843 = vmatprep.subr.msk.mxu1 %vm2182_vm3, %v4966_v24  ;;  %v2878_v39 = vld [vmem:[%s5213_s10 + $0x4] sm:$0x3] }
 0x75d   :  { %2844 = vmatpush1.msk.msra.mxu1 %vm2182_vm3, %v4968_v25  ;;  %2361 = vmatprep.mubr.f32.mxu1 %v4305_v18 }
 0x75e   :  { %3504 = vmatprep.subr.bf16.mxu1 %v3503_v41  ;;  %v3569_v41 = vpack.c.bf16 %v2883_v22, %v2882_v21 }
 0x760   :  { %2845 = vmatmul.mubr.msk.f32.vlgmr.msra.gmra.mrb[10].mxu1 %vm2178_vm4, %v2842_v30 }
 0x761   :  { %3506 = vmatpush3.bf16.msra.mxu1 %v3505_v31  ;;  %v2886_v31 = vld [vmem:[%s5214_s11 + $0x220] sm:$0xff] }
 0x762   :  { %3508 = vmatprep.subr.bf16.mxu1 %v3507_v33  ;;  %v2887_v33 = vld [vmem:[%s5214_s11 + $0x228] sm:$0xff] }
 0x763   :  { %v3577_v36 = vpack.c.bf16 %v2887_v33, %v2886_v31 }
 0x765   :  { %3510 = vmatpush3.bf16.msra.mxu1 %v3509_v38  ;;  %v2888_v38 = vld [vmem:[%s5214_s11 + $0x230] sm:$0xff] }
 0x766   :  { %3512 = vmatprep.subr.bf16.mxu1 %v3511_v40  ;;  %v2889_v40 = vld [vmem:[%s5214_s11 + $0x238] sm:$0xff] }
 0x767   :  { %v3581_v44 = vpack.c.bf16 %v2889_v40, %v2888_v38 }
 0x769   :  { %3514 = vmatpush3.bf16.msra.mxu1 %v3513_v46  ;;  %v2890_v46 = vld [vmem:[%s5214_s11 + $0x240] sm:$0xff] }
 0x76a   :  { %3516 = vmatprep.subr.bf16.mxu1 %v3515_v47  ;;  %v2891_v47 = vld [vmem:[%s5214_s11 + $0x248] sm:$0xff] }
 0x76b   :  { %v3585_v32 = vpack.c.bf16 %v2891_v47, %v2890_v46 }
 0x76d   :  { %3518 = vmatpush3.bf16.msra.mxu1 %v3517_v53  ;;  %v2892_v53 = vld [vmem:[%s5214_s11 + $0x250] sm:$0xff] }
 0x76e   :  { %3520 = vmatprep.subr.bf16.mxu1 %v3519_v54  ;;  %v2893_v54 = vld [vmem:[%s5214_s11 + $0x258] sm:$0xff] }
 0x76f   :  { %v3589_v55 = vpack.c.bf16 %v2893_v54, %v2892_v53 }
 0x771   :  { %3522 = vmatpush3.bf16.msra.mxu1 %v3521_v59  ;;  %v2894_v59 = vld [vmem:[%s5214_s11 + $0x260] sm:$0xff] }
 0x772   :  { %3524 = vmatprep.subr.bf16.mxu1 %v3523_v60  ;;  %v2895_v60 = vld [vmem:[%s5214_s11 + $0x268] sm:$0xff] }
 0x773   :  { %v3593_v61 = vpack.c.bf16 %v2895_v60, %v2894_v59 }
 0x775   :  { %3526 = vmatpush3.bf16.msra.mxu1 %v3525_v1  ;;  %v2896_v1 = vld [vmem:[%s5214_s11 + $0x270] sm:$0xff] }
 0x776   :  { %3528 = vmatprep.subr.bf16.mxu1 %v3527_v2  ;;  %v2897_v2 = vld [vmem:[%s5214_s11 + $0x278] sm:$0xff] }
 0x777   :  { %v3597_v3 = vpack.c.bf16 %v2897_v2, %v2896_v1 }
 0x779   :  { %3530 = vmatpush3.bf16.msra.mxu1 %v3529_v5 }
 0x77a   :  { %3532 = vmatprep.subr.bf16.mxu1 %v3531_v6 }
 0x77d   :  { %3534 = vmatpush3.bf16.msra.mxu1 %v3533_v9 }
 0x77e   :  { %2879 = vmatprep.subr.msk.mxu1 %vm2182_vm3, %v4966_v24  ;;  %v2901_v24 = vld [vmem:[%s5214_s11 + $0x298] sm:$0xff] }
 0x77f   :  { %v3571_v26 = vpack.c.bf16 %v2901_v24, %v2900_v23 }
 0x82f   :  { %v2255_v13 = vpop.f32.mrb[8].mxu1 }
 0x830   :  { %v2257_v14 = vpop.f32.mrb[9].mxu1 }
 0x831   :  { %2535 = vmatprep.mubr.f32.mxu0 %v2257_v14  ;;  %v2914_v14 = vld [vmem:[%s5215_s12] ss:$0 sm:$0xff] }
 0x832   :  { %2536 = vmatmul.mubr.f32.vlgmr.msra.gmra.mrb[18].mxu0 %v2255_v13 }
 0x833   :  { %v2363_v17 = vpop.f32.mrb[10].mxu1 }
 0x834   :  { %v2365_v19 = vpop.f32.mrb[11].mxu1 }
 0x835   :  { %2465 = vmatprep.mubr.f32.mxu1 %v2365_v19 }
 0x836   :  { %2466 = vmatmul.mubr.f32.vlgmr.msra.gmra.mrb[12].mxu1 %v2363_v17 }
 0x837   :  { %2880 = vmatpush1.msk.msra.mxu1 %vm2182_vm3, %v4968_v25  ;;  %2610 = vmatprep.mubr.f32.mxu1 %v4305_v18  ;;  %v2902_v25 = vld [vmem:[%s5214_s11 + $0x2a0] sm:$0xff]  ;;  %v2903_v18 = vld [vmem:[%s5214_s11 + $0x2a8] sm:$0xff]  ;;  %s4306_s11 = smov [#allocation14]  }
 0x838   :  { %3568 = vmatprep.subr.bf16.mxu1 %v3567_v20  ;;  %v3575_v30 = vpack.c.bf16 %v2903_v18, %v2902_v25  ;;  %s2737_s27 = sshll.u32 %s4306_s11, 4  ;;  %s2738_s27 = int_to_ptr.vmem [resolvable:$true] %s2737_s27 }
 0x839   :  { %s4262_s9 = scalar_lea.vmem %s2738_s27, 32  ;;  %p4267_p1 = scmp.lt.s32.totalorder %s2738_s27, %s2738_s27 }
 0x83a   :  { %2881 = vmatmul.mubr.msk.f32.vlgmr.msra.gmra.mrb[14].mxu1 %vm2178_vm4, %v2878_v39  ;;  %p4263_p0 = scmp.ne.s32.totalorder %s2738_s27, %s4262_s9  ;;  %p4268_p2 = scmp.lt.s32.totalorder %s4262_s9, %s4262_s9 }
 0x83b   :  { %3570 = vmatpush3.bf16.msra.mxu1 %v3569_v41 }
 0x83c   :  { %3572 = vmatprep.subr.bf16.mxu1 %v3571_v26  ;;  %p4269_p3 = por %p4268_p2, %p4267_p1 }
 0x83e   :  { %p4270_p4 = pnand %p4269_p3, %p4263_p0 }
 0x83f   :  { %3574 = vmatpush3.bf16.msra.mxu1 %v3573_v29 }
 0x840   :  { %3576 = vmatprep.subr.bf16.mxu1 %v3575_v30 }
 0x843   :  { %3578 = vmatpush3.bf16.msra.mxu1 %v3577_v36 }
 0x844   :  { %3580 = vmatprep.subr.bf16.mxu1 %v3579_v37 }
 0x847   :  { %3582 = vmatpush3.bf16.msra.mxu1 %v3581_v44 }
 0x848   :  { %3584 = vmatprep.subr.bf16.mxu1 %v3583_v45 }
 0x84b   :  { %3586 = vmatpush3.bf16.msra.mxu1 %v3585_v32 }
 0x84c   :  { %3588 = vmatprep.subr.bf16.mxu1 %v3587_v52 }
 0x84f   :  { %3590 = vmatpush3.bf16.msra.mxu1 %v3589_v55 }
 0x850   :  { %3592 = vmatprep.subr.bf16.mxu1 %v3591_v58 }
 0x853   :  { %3594 = vmatpush3.bf16.msra.mxu1 %v3593_v61 }
 0x854   :  { %3596 = vmatprep.subr.bf16.mxu1 %v3595_v0 }
 0x857   :  { %3598 = vmatpush3.bf16.msra.mxu1 %v3597_v3 }
 0x905   :  { %v3000_v49 = vpop.f32.mrb[18].mxu0 }
 0x906   :  { %v3001_v4 = vpop.f32.mrb[19].mxu0 }
 0x907   :  { %v3002_v50 = vadd.f32 %v3001_v4, %v3000_v49 }
 0x909   :  { %v2965_v5 = vpop.f32.mrb[12].mxu1 }
 0x90a   :  { %v2966_v6 = vpop.f32.mrb[13].mxu1 }
 0x90b   :  { %v2967_v7 = vadd.f32 %v2966_v6, %v2965_v5 }
 0x90d   :  { %v2538_v8 = vadd.f32 %v3002_v50, %v2967_v7  ;;  %v2612_v9 = vpop.f32.mrb[14].mxu1 }
 0x90e   :  { %v2614_v10 = vpop.f32.mrb[15].mxu1 }
 0x90f   :  { %2714 = vmatprep.mubr.f32.mxu1 %v2614_v10 }
 0x910   :  { %2715 = vmatmul.mubr.f32.vlgmr.msra.gmra.mrb[16].mxu1 %v2612_v9 }
 0x9e3   :  { %v3035_v11 = vpop.f32.mrb[16].mxu1 }
 0x9e4   :  { %v3036_v12 = vpop.f32.mrb[17].mxu1 }
 0x9e5   :  { %v3037_v13 = vadd.f32 %v3036_v12, %v3035_v11 }
 0x9e7   :  { %v2720_v15 = vadd.f32 %v3037_v13, %v2538_v8 }
 0x9e9   :  { %v2728_v16 = vadd.f32 %v2914_v14, %v2720_v15 }
 0x9eb   :  { %2730 = vst.msk [vmem:[#allocation14] sm:$0x3] %vm2729_vm5, %v2728_v16 }
 0x9ec   :  { %4273 = shalt.err (!%p4270_p4)
}
 0x9ed   :  { %s4274_s18 = scalar_lea.hbm %s5216_s13, 32 }
 0x9ee   :  { %p4275_p5 = scmp.ne.s32.totalorder %s5216_s13, %s4274_s18  ;;  %p4278_p6 = scmp.lt.u32.totalorder %s4274_s18, %s5216_s13 }
 0x9f0   :  { %p4280_p7 = pnand %p4278_p6, %p4275_p5 }
 0x9f2   :  { %4283 = shalt.err (!%p4280_p7)
}
 0x9f3   :  { %2740 = dma.vmem_to_hbm [thread:$0]  %s2738_s27, 32, %s5216_s13, [#allocation4]  }
 0x9f4   :  { %4292 = dma.done.wait [#allocation4], 32  }
 0x9f5   :  { %4293 = vsyncadd [#allocation4], 4294967264 }
 0x9f6   :  { %2744 = vsyncpa [#allocation3], 1 }
 0x9f7   :  { %2745 = vsyncpa [#allocation6], 1 }
 0x9f8   :  { %2746 = vsyncpa [#allocation9], 1 }
 0x9f9   :  { %2747 = vsyncpa [#allocation12], 1 }
 0x9fa   :  { %2748 = vsyncpa [#allocation4], 1 }

</bundles_post_ra>
